<compile_context>
chip_gen: v7x
topology: tpu7x:2x2x1
jax: 0.10.0
libtpu: 0.0.40
codegen_flags: <defaults>
</compile_context>

<pallas_src>
import functools

import jax
import jax.numpy as jnp
from jax import lax
from jax.experimental import pallas as pl
from jax.experimental.pallas import tpu as pltpu

KSIZE = 3            # kernel_size=3, stride=1, dilation=1 -> same padding = 1
PAD = KSIZE // 2
LANE = 128           # TPU lane width; channel dims are padded to multiples of it


def _round_up(x, m):
    return (x + m - 1) // m * m


def _pick_row_tile(h, w):
    """Largest divisor of H whose tile has <= ~512 output pixels."""
    target_rows = max(1, 512 // max(w, 1))
    best = 1
    for t in range(1, h + 1):
        if h % t == 0 and t <= target_rows:
            best = t
    return best


def conv_bn_kernel(x_ref, w_ref, shift_ref, o_ref):
    """One (batch, row-tile) block per grid step.

    x_ref:     (1, 1, tH+2, W+2, Cin_p)  halo'd, channel-padded input tile (NHWC)
    w_ref:     (9*Cin_p, Cout_p)         im2col weight slab, BN scale pre-folded
    shift_ref: (1, Cout_p)               BN shift = beta - mean*scale (f32)
    o_ref:     (1, tH, W, Cout_p)        lane-dense output tile
    """
    th = o_ref.shape[1]
    ow = o_ref.shape[2]
    cin_p = x_ref.shape[-1]
    cout_p = o_ref.shape[-1]

    # Build the im2col slab once: 9 shifted taps concatenated on the lane axis.
    # Each tap is a multiple of 128 lanes wide, so the concat lands on whole
    # vreg boundaries; the kh shift is pure addressing (3rd-from-minor dim).
    taps = []
    for kh in range(KSIZE):
        for kw in range(KSIZE):
            taps.append(
                x_ref[0, 0, kh:kh + th, kw:kw + ow, :].reshape(th * ow, cin_p))
    im2col = jnp.concatenate(taps, axis=1)                  # (tH*W, 9*Cin_p)

    # Single big MXU matmul, f32 accumulation.
    acc = jnp.dot(im2col, w_ref[...], preferred_element_type=jnp.float32)

    # BN scale already folded into the weights; only the shift remains (f32 VPU).
    y = acc + shift_ref[...]
    o_ref[0, :, :, :] = y.reshape(th, ow, cout_p).astype(o_ref.dtype)


@functools.partial(jax.jit, static_argnames=("compute_dtype", "row_tile"))
def conv_layer_forward(x_nchw, w_oihw, bn_gamma, bn_beta, bn_mean, bn_var,
                       eps=1e-5, *, compute_dtype=jnp.bfloat16, row_tile=None):
    """Forward pass of ConvLayer (dropout=None since dropout=0, act=Identity)."""
    N, Cin, H, W = x_nchw.shape
    Cout = w_oihw.shape[0]

    cin_p = _round_up(Cin, LANE)
    cout_p = _round_up(Cout, LANE)

    th = row_tile if row_tile is not None else _pick_row_tile(H, W)
    if H % th != 0:
        th = max(t for t in range(1, th + 1) if H % t == 0)
    n_t = H // th
    Wp = W + 2 * PAD
    halo_rows = th + 2 * PAD

    # ---- glue: BN folding, layout, channel/spatial padding (plain JAX) ----
    scale = bn_gamma / jnp.sqrt(bn_var + eps)                     # (Cout,)
    shift = (bn_beta - bn_mean * scale).astype(jnp.float32)       # (Cout,)

    # weights: OIHW -> HWIO, fold BN scale, zero-pad channels, flatten to 2-D.
    w_hwio = jnp.transpose(w_oihw, (2, 3, 1, 0)) * scale[None, None, None, :]
    w_hwio = jnp.pad(w_hwio,
                     ((0, 0), (0, 0), (0, cin_p - Cin), (0, cout_p - Cout)))
    w2d = w_hwio.reshape(KSIZE * KSIZE * cin_p, cout_p).astype(compute_dtype)

    shift2 = jnp.pad(shift, (0, cout_p - Cout)).reshape(1, cout_p)

    # input: NCHW -> NHWC, cast to MXU operand dtype, pad halo + lanes in one op.
    x_nhwc = jnp.transpose(x_nchw, (0, 2, 3, 1)).astype(compute_dtype)
    x_pad = jnp.pad(x_nhwc,
                    ((0, 0), (PAD, PAD), (PAD, PAD), (0, cin_p - Cin)))
    # Overlapping row tiles (tH + halo) so each grid step is self-contained.
    row_idx = (jnp.arange(n_t) * th)[:, None] + jnp.arange(halo_rows)[None, :]
    x_tiles = x_pad[:, row_idx, :, :]          # (N, nT, tH+2, W+2, Cin_p)

    # Explicit VMEM budget with headroom, capped so tiles also fit v7x (64 MiB).
    cdt = jnp.dtype(compute_dtype).itemsize
    odt = jnp.dtype(x_nchw.dtype).itemsize
    est = (2 * halo_rows * Wp * cin_p * cdt                 # input double-buffer
           + 2 * th * W * cout_p * odt                      # output double-buffer
           + 2 * KSIZE * KSIZE * cin_p * cout_p * cdt       # weight slab
           + th * W * KSIZE * KSIZE * cin_p * cdt           # im2col slab
           + 2 * th * W * cout_p * 4)                       # f32 acc + epilogue
    vmem_limit = int(min(64 * 2 ** 20, max(32 * 2 ** 20, 2 * est)))

    out_nhwc_p = pl.pallas_call(
        conv_bn_kernel,
        out_shape=jax.ShapeDtypeStruct((N, H, W, cout_p), x_nchw.dtype),
        grid_spec=pltpu.PrefetchScalarGridSpec(
            num_scalar_prefetch=0,
            grid=(N, n_t),
            in_specs=[
                pl.BlockSpec((1, 1, halo_rows, Wp, cin_p),
                             lambda n, t: (n, t, 0, 0, 0)),
                pl.BlockSpec((KSIZE * KSIZE * cin_p, cout_p),
                             lambda n, t: (0, 0)),
                pl.BlockSpec((1, cout_p), lambda n, t: (0, 0)),
            ],
            out_specs=pl.BlockSpec((1, th, W, cout_p),
                                   lambda n, t: (n, t, 0, 0)),
        ),
        compiler_params=pltpu.CompilerParams(
            dimension_semantics=("parallel", "parallel"),
            vmem_limit_bytes=vmem_limit),
    )(x_tiles, w2d, shift2)

    # TODO(synk): return NHWC directly (skip this transpose + channel slice) if
    # the consumer accepts channels-last; kept NCHW to match torch semantics.
    out = out_nhwc_p[..., :Cout]
    return jnp.transpose(out, (0, 3, 1, 2))


def reference_forward(x_nchw, w_oihw, bn_gamma, bn_beta, bn_mean, bn_var,
                      eps=1e-5):
    """Pure-JAX reference (lax conv) for a correctness check."""
    y = lax.conv_general_dilated(
        x_nchw, w_oihw,
        window_strides=(1, 1),
        padding=((1, 1), (1, 1)),
        dimension_numbers=("NCHW", "OIHW", "NCHW"),
    )
    scale = (bn_gamma / jnp.sqrt(bn_var + eps)).reshape(1, -1, 1, 1)
    shift = (bn_beta - bn_mean * bn_gamma / jnp.sqrt(bn_var + eps)).reshape(
        1, -1, 1, 1)
    return y * scale + shift


if __name__ == "__main__":
    key = jax.random.PRNGKey(0)
    k_x, k_w, k_g, k_b, k_m, k_v = jax.random.split(key, 6)

    N, Cin, H, W = 2, 4, 16, 16
    Cout = 8

    x = jax.random.normal(k_x, (N, Cin, H, W), dtype=jnp.float32)
    # Conv2d weight (Cout, Cin, 3, 3), no bias (use_bias=False default).
    w = jax.random.normal(k_w, (Cout, Cin, KSIZE, KSIZE), dtype=jnp.float32) * 0.1
    # BatchNorm2d params / running stats (eval-mode semantics, deterministic).
    gamma = 1.0 + 0.1 * jax.random.normal(k_g, (Cout,), dtype=jnp.float32)
    beta = 0.1 * jax.random.normal(k_b, (Cout,), dtype=jnp.float32)
    run_mean = 0.1 * jax.random.normal(k_m, (Cout,), dtype=jnp.float32)
    run_var = jnp.abs(1.0 + 0.1 * jax.random.normal(k_v, (Cout,),
                                                    dtype=jnp.float32))

    ref = reference_forward(x, w, gamma, beta, run_mean, run_var)

    # f32-operand path (tight tolerance), auto row tile (single row block).
    out_f32 = conv_layer_forward(x, w, gamma, beta, run_mean, run_var,
                                 compute_dtype=jnp.float32)
    out_f32 = jax.block_until_ready(out_f32)
    assert out_f32.shape == (N, Cout, H, W)
    assert jnp.allclose(out_f32, ref, rtol=2e-3, atol=2e-3), "f32 mismatch"

    # bf16 MXU-operand / f32-accumulate path with explicit row tiling
    # (exercises the halo'd multi-tile grid; recommended config on v6e/v7x).
    out_bf16 = conv_layer_forward(x, w, gamma, beta, run_mean, run_var,
                                  compute_dtype=jnp.bfloat16, row_tile=8)
    out_bf16 = jax.block_until_ready(out_bf16)
    assert out_bf16.shape == (N, Cout, H, W)
    assert jnp.allclose(out_bf16, ref, rtol=3e-2, atol=3e-2), "bf16 mismatch"

    print("KERNEL_OK")
</pallas_src>

<mosaic_0001>
module attributes {stable_mosaic.version = 11 : i64} {
  func.func @conv_bn_kernel(%arg0: i32, %arg1: i32, %arg2: memref<1x1x18x18x128xf32, #tpu.memory_space<vmem>>, %arg3: memref<1152x128xf32, #tpu.memory_space<vmem>>, %arg4: memref<1x128xf32, #tpu.memory_space<vmem>>, %arg5: memref<1x16x16x128xf32, #tpu.memory_space<vmem>>) attributes {dimension_semantics = [#tpu.dimension_semantics<parallel>, #tpu.dimension_semantics<parallel>], iteration_bounds = array<i64: 2, 1>, scalar_prefetch = 0 : i64, scratch_operands = 0 : i64, tpu.core_type = #tpu.core_type<tc>, window_params = [{transform_indices = @transform_0, window_bounds = array<i64: 1, 1, 18, 18, 128>}, {pipeline_mode = #tpu.pipeline_mode<synchronous>, transform_indices = @transform_1, window_bounds = array<i64: 1152, 128>}, {pipeline_mode = #tpu.pipeline_mode<synchronous>, transform_indices = @transform_2, window_bounds = array<i64: 1, 128>}, {transform_indices = @transform_3, window_bounds = array<i64: 1, 16, 16, 128>}]} {
    %c0 = arith.constant 0 : index
    %c0_0 = arith.constant 0 : index
    %c0_1 = arith.constant 0 : index
    %c0_2 = arith.constant 0 : index
    %c0_3 = arith.constant 0 : index
    %0 = vector.load %arg2[%c0, %c0_0, %c0_1, %c0_2, %c0_3] : memref<1x1x18x18x128xf32, #tpu.memory_space<vmem>>, vector<1x1x16x16x128xf32>
    %1 = vector.shape_cast %0 : vector<1x1x16x16x128xf32> to vector<16x16x128xf32>
    %2 = vector.shape_cast %1 : vector<16x16x128xf32> to vector<256x128xf32>
    %c0_4 = arith.constant 0 : index
    %c0_5 = arith.constant 0 : index
    %c0_6 = arith.constant 0 : index
    %c1 = arith.constant 1 : index
    %c0_7 = arith.constant 0 : index
    %3 = vector.load %arg2[%c0_4, %c0_5, %c0_6, %c1, %c0_7] : memref<1x1x18x18x128xf32, #tpu.memory_space<vmem>>, vector<1x1x16x16x128xf32>
    %4 = vector.shape_cast %3 : vector<1x1x16x16x128xf32> to vector<16x16x128xf32>
    %5 = vector.shape_cast %4 : vector<16x16x128xf32> to vector<256x128xf32>
    %c0_8 = arith.constant 0 : index
    %c0_9 = arith.constant 0 : index
    %c0_10 = arith.constant 0 : index
    %c2 = arith.constant 2 : index
    %c0_11 = arith.constant 0 : index
    %6 = vector.load %arg2[%c0_8, %c0_9, %c0_10, %c2, %c0_11] : memref<1x1x18x18x128xf32, #tpu.memory_space<vmem>>, vector<1x1x16x16x128xf32>
    %7 = vector.shape_cast %6 : vector<1x1x16x16x128xf32> to vector<16x16x128xf32>
    %8 = vector.shape_cast %7 : vector<16x16x128xf32> to vector<256x128xf32>
    %c0_12 = arith.constant 0 : index
    %c0_13 = arith.constant 0 : index
    %c1_14 = arith.constant 1 : index
    %c0_15 = arith.constant 0 : index
    %c0_16 = arith.constant 0 : index
    %9 = vector.load %arg2[%c0_12, %c0_13, %c1_14, %c0_15, %c0_16] : memref<1x1x18x18x128xf32, #tpu.memory_space<vmem>>, vector<1x1x16x16x128xf32>
    %10 = vector.shape_cast %9 : vector<1x1x16x16x128xf32> to vector<16x16x128xf32>
    %11 = vector.shape_cast %10 : vector<16x16x128xf32> to vector<256x128xf32>
    %c0_17 = arith.constant 0 : index
    %c0_18 = arith.constant 0 : index
    %c1_19 = arith.constant 1 : index
    %c1_20 = arith.constant 1 : index
    %c0_21 = arith.constant 0 : index
    %12 = vector.load %arg2[%c0_17, %c0_18, %c1_19, %c1_20, %c0_21] : memref<1x1x18x18x128xf32, #tpu.memory_space<vmem>>, vector<1x1x16x16x128xf32>
    %13 = vector.shape_cast %12 : vector<1x1x16x16x128xf32> to vector<16x16x128xf32>
    %14 = vector.shape_cast %13 : vector<16x16x128xf32> to vector<256x128xf32>
    %c0_22 = arith.constant 0 : index
    %c0_23 = arith.constant 0 : index
    %c1_24 = arith.constant 1 : index
    %c2_25 = arith.constant 2 : index
    %c0_26 = arith.constant 0 : index
    %15 = vector.load %arg2[%c0_22, %c0_23, %c1_24, %c2_25, %c0_26] : memref<1x1x18x18x128xf32, #tpu.memory_space<vmem>>, vector<1x1x16x16x128xf32>
    %16 = vector.shape_cast %15 : vector<1x1x16x16x128xf32> to vector<16x16x128xf32>
    %17 = vector.shape_cast %16 : vector<16x16x128xf32> to vector<256x128xf32>
    %c0_27 = arith.constant 0 : index
    %c0_28 = arith.constant 0 : index
    %c2_29 = arith.constant 2 : index
    %c0_30 = arith.constant 0 : index
    %c0_31 = arith.constant 0 : index
    %18 = vector.load %arg2[%c0_27, %c0_28, %c2_29, %c0_30, %c0_31] : memref<1x1x18x18x128xf32, #tpu.memory_space<vmem>>, vector<1x1x16x16x128xf32>
    %19 = vector.shape_cast %18 : vector<1x1x16x16x128xf32> to vector<16x16x128xf32>
    %20 = vector.shape_cast %19 : vector<16x16x128xf32> to vector<256x128xf32>
    %c0_32 = arith.constant 0 : index
    %c0_33 = arith.constant 0 : index
    %c2_34 = arith.constant 2 : index
    %c1_35 = arith.constant 1 : index
    %c0_36 = arith.constant 0 : index
    %21 = vector.load %arg2[%c0_32, %c0_33, %c2_34, %c1_35, %c0_36] : memref<1x1x18x18x128xf32, #tpu.memory_space<vmem>>, vector<1x1x16x16x128xf32>
    %22 = vector.shape_cast %21 : vector<1x1x16x16x128xf32> to vector<16x16x128xf32>
    %23 = vector.shape_cast %22 : vector<16x16x128xf32> to vector<256x128xf32>
    %c0_37 = arith.constant 0 : index
    %c0_38 = arith.constant 0 : index
    %c2_39 = arith.constant 2 : index
    %c2_40 = arith.constant 2 : index
    %c0_41 = arith.constant 0 : index
    %24 = vector.load %arg2[%c0_37, %c0_38, %c2_39, %c2_40, %c0_41] : memref<1x1x18x18x128xf32, #tpu.memory_space<vmem>>, vector<1x1x16x16x128xf32>
    %25 = vector.shape_cast %24 : vector<1x1x16x16x128xf32> to vector<16x16x128xf32>
    %26 = vector.shape_cast %25 : vector<16x16x128xf32> to vector<256x128xf32>
    %27 = tpu.concatenate %2, %5, %8, %11, %14, %17, %20, %23, %26 in 1 : vector<256x128xf32>, vector<256x128xf32>, vector<256x128xf32>, vector<256x128xf32>, vector<256x128xf32>, vector<256x128xf32>, vector<256x128xf32>, vector<256x128xf32>, vector<256x128xf32> -> vector<256x1152xf32>
    %c0_42 = arith.constant 0 : index
    %c0_43 = arith.constant 0 : index
    %28 = vector.load %arg3[%c0_42, %c0_43] : memref<1152x128xf32, #tpu.memory_space<vmem>>, vector<1152x128xf32>
    %cst = arith.constant dense<0.000000e+00> : vector<256x128xf32>
    %29 = tpu.matmul %27, %28, %cst {dimension_numbers = #tpu.dot_dimension_numbers<[1], [0], [0], [1], [0, 0, 1, 1], [], []>} : vector<256x1152xf32>, vector<1152x128xf32>, vector<256x128xf32> -> vector<256x128xf32>
    %c0_44 = arith.constant 0 : index
    %c0_45 = arith.constant 0 : index
    %30 = vector.load %arg4[%c0_44, %c0_45] : memref<1x128xf32, #tpu.memory_space<vmem>>, vector<1x128xf32>
    %31 = vector.broadcast %30 : vector<1x128xf32> to vector<256x128xf32>
    %32 = arith.addf %29, %31 : vector<256x128xf32>
    %33 = vector.shape_cast %32 : vector<256x128xf32> to vector<16x16x128xf32>
    %c0_46 = arith.constant 0 : index
    %c0_47 = arith.constant 0 : index
    %c0_48 = arith.constant 0 : index
    %c0_49 = arith.constant 0 : index
    %34 = vector.load %arg5[%c0_46, %c0_47, %c0_48, %c0_49] : memref<1x16x16x128xf32, #tpu.memory_space<vmem>>, vector<1x16x16x128xf32>
    %35 = vector.shape_cast %34 : vector<1x16x16x128xf32> to vector<16x16x128xf32>
    %36 = vector.shape_cast %33 : vector<16x16x128xf32> to vector<1x16x16x128xf32>
    tpu.vector_store %arg5[%c0_46, %c0_47, %c0_48, %c0_49], %36 {strides = array<i32>} : memref<1x16x16x128xf32, #tpu.memory_space<vmem>>, vector<1x16x16x128xf32>,
    return
  }
  func.func @transform_0(%arg0: i32, %arg1: i32) -> (i32, i32, i32, i32, i32) {
    %c0_i32 = arith.constant 0 : i32
    %c0_i32_0 = arith.constant 0 : i32
    %c0_i32_1 = arith.constant 0 : i32
    %c0_i32_2 = arith.constant 0 : i32
    return %arg0, %arg1, %c0_i32, %c0_i32_0, %c0_i32_1 : i32, i32, i32, i32, i32
  }
  func.func @transform_1(%arg0: i32, %arg1: i32) -> (i32, i32) {
    %c0_i32 = arith.constant 0 : i32
    %c0_i32_0 = arith.constant 0 : i32
    %c0_i32_1 = arith.constant 0 : i32
    return %c0_i32, %c0_i32_0 : i32, i32
  }
  func.func @transform_2(%arg0: i32, %arg1: i32) -> (i32, i32) {
    %c0_i32 = arith.constant 0 : i32
    %c0_i32_0 = arith.constant 0 : i32
    %c0_i32_1 = arith.constant 0 : i32
    return %c0_i32, %c0_i32_0 : i32, i32
  }
  func.func @transform_3(%arg0: i32, %arg1: i32) -> (i32, i32, i32, i32) {
    %c0_i32 = arith.constant 0 : i32
    %c0_i32_0 = arith.constant 0 : i32
    %c0_i32_1 = arith.constant 0 : i32
    return %arg0, %arg1, %c0_i32, %c0_i32_0 : i32, i32, i32, i32
  }
}

</mosaic_0001>

<bundles_post_ra>
// kernel: conv_layer_forward.1
= control target key start
LH: loop header
LB: loop body
LE: loop exit
PB: predicated region body
PF: predicated region fallthrough
CT: control target
= control target key end

     0   :  { %s2731_s12 = smov 0   ;;  %s2733_s13 = smov 0   ;;  %s4205_s0 = inlined_call_operand.vmem [shape: f32[2,1,18,18,128], index: 0, kind: input, shape index: {}]   ;;  %s4206_s1 = inlined_call_operand.vmem [shape: f32[1152,128], index: 1, kind: input, shape index: {}]   ;;  %s4207_s2 = inlined_call_operand.vmem [shape: f32[1,128], index: 2, kind: input, shape index: {}]   ;;  %s4208_s3 = inlined_call_operand.vmem [shape: f32[2,16,16,128], index: 3, kind: output, shape index: {}]  }
   0x1   :  { %s2735_s14 = smov 0  }
   0x2 LB: > { %s25_s15 = sadd.s32 1, %s2704_s13  ;;  %p1908_p0 = scmp.ge.s32.totalorder %s2708_s14, 1  ;;  %s2708_s14 = sphi %s2735_s14, %s13_s14   ;;  %s2704_s13 = sphi %s2733_s13, %s4350_s13   ;;  %s2700_s12 = sphi %s2731_s12, %s4349_s12  }
   0x3   : > { %p27_p1 = scmp.ge.s32.totalorder %s25_s15, 2  ;;  %p157_p2 = scmp.lt.s32.totalorder %s2708_s14, 3 }
   0x5   : > { %s4352_s15 = smov (%p27_p1, %s25_s15), 0  ;;  %p158_p3 = pnand %p1908_p0, %p157_p2 }
   0x7   : > { %161 = sbr.rel (%p158_p3) target bundleno = 582 (0x246), region = 32 }
   0xe   : > { %v500_v0 = vld [vmem:[%s4206_s1] sm:$0xff]  ;;  %v501_v1 = vld [vmem:[%s4206_s1 + $0x8] sm:$0xff]  ;;  %v4209_v3 = vmov 0.0|0.0   ;;  %v502_v6 = vld [vmem:[%s4206_s1 + $0x10] sm:$0xff]  ;;  %p190_p4 = scmp.lt.s32.totalorder %s2700_s12, 1 }
   0xf   : > { %v532_v2 = vld [vmem:[%s4206_s1 + $0x100] sm:$0xff]  ;;  %2236 = vmatprep.subr.bf16.mxu1 %v4209_v3  ;;  %2284 = vmatprep.subr.bf16.mxu0 %v4209_v3  ;;  %v2237_v4 = vpack.c.bf16 %v501_v1, %v500_v0  ;;  %v533_v5 = vld [vmem:[%s4206_s1 + $0x108] sm:$0xff]  ;;  %v503_v7 = vld [vmem:[%s4206_s1 + $0x18] sm:$0xff] }
  0x10   : > { %v2285_v8 = vpack.c.bf16 %v533_v5, %v532_v2  ;;  %v534_v9 = vld [vmem:[%s4206_s1 + $0x110] sm:$0xff]  ;;  %v535_v10 = vld [vmem:[%s4206_s1 + $0x118] sm:$0xff]  ;;  %v2240_v11 = vpack.c.bf16 %v503_v7, %v502_v6  ;;  %v504_v13 = vld [vmem:[%s4206_s1 + $0x20] sm:$0xff]  ;;  %s4354_s12 = smov (!%p190_p4, %s2700_s12), 1 }
  0x11   : > { %2238 = vmatpush1.bf16.msra.mxu1 %v2237_v4  ;;  %v2288_v12 = vpack.c.bf16 %v535_v10, %v534_v9  ;;  %v505_v14 = vld [vmem:[%s4206_s1 + $0x28] sm:$0xff]  ;;  %v536_v15 = vld [vmem:[%s4206_s1 + $0x120] sm:$0xff]  ;;  %v506_v19 = vld [vmem:[%s4206_s1 + $0x30] sm:$0xff]  ;;  %s2660_s6 = smul.u32 432, %s4354_s12  ;;  %s2107_s20 = sshll.u32 %s4354_s12, 8 }
  0x12   : > { %2286 = vmatpush1.bf16.msra.mxu0 %v2285_v8  ;;  %2239 = vmatprep.subr.bf16.mxu1 %v4209_v3  ;;  %v537_v16 = vld [vmem:[%s4206_s1 + $0x128] sm:$0xff]  ;;  %v2243_v17 = vpack.c.bf16 %v505_v14, %v504_v13  ;;  %v507_v20 = vld [vmem:[%s4206_s1 + $0x38] sm:$0xff]  ;;  %v538_v21 = vld [vmem:[%s4206_s1 + $0x130] sm:$0xff]  ;;  %s4093_s24 = scalar_lea.vmem %s4208_s3, %s2107_s20 }
  0x13   : > { %2287 = vmatprep.subr.bf16.mxu0 %v4209_v3  ;;  %v2291_v18 = vpack.c.bf16 %v537_v16, %v536_v15  ;;  %v539_v22 = vld [vmem:[%s4206_s1 + $0x138] sm:$0xff]  ;;  %v2246_v23 = vpack.c.bf16 %v507_v20, %v506_v19  ;;  %v508_v25 = vld [vmem:[%s4206_s1 + $0x40] sm:$0xff]  ;;  %v509_v26 = vld [vmem:[%s4206_s1 + $0x48] sm:$0xff]  ;;  %s2841_s21 = scalar_lea.vmem %s4205_s0, %s2660_s6 }
  0x14   : > { %v2294_v24 = vpack.c.bf16 %v539_v22, %v538_v21  ;;  %v540_v27 = vld [vmem:[%s4206_s1 + $0x140] sm:$0xff]  ;;  %v541_v28 = vld [vmem:[%s4206_s1 + $0x148] sm:$0xff]  ;;  %v2249_v29 = vpack.c.bf16 %v509_v26, %v508_v25  ;;  %v510_v31 = vld [vmem:[%s4206_s1 + $0x50] sm:$0xff] }
  0x15   : > { %2241 = vmatpush1.bf16.msra.mxu1 %v2240_v11  ;;  %v2297_v30 = vpack.c.bf16 %v541_v28, %v540_v27  ;;  %v511_v32 = vld [vmem:[%s4206_s1 + $0x58] sm:$0xff]  ;;  %v542_v33 = vld [vmem:[%s4206_s1 + $0x150] sm:$0xff]  ;;  %v512_v37 = vld [vmem:[%s4206_s1 + $0x60] sm:$0xff] }
  0x16   : > { %2289 = vmatpush1.bf16.msra.mxu0 %v2288_v12  ;;  %2242 = vmatprep.subr.bf16.mxu1 %v4209_v3  ;;  %v543_v34 = vld [vmem:[%s4206_s1 + $0x158] sm:$0xff]  ;;  %v2252_v35 = vpack.c.bf16 %v511_v32, %v510_v31  ;;  %v513_v38 = vld [vmem:[%s4206_s1 + $0x68] sm:$0xff]  ;;  %v544_v39 = vld [vmem:[%s4206_s1 + $0x160] sm:$0xff] }
  0x17   : > { %2290 = vmatprep.subr.bf16.mxu0 %v4209_v3  ;;  %v2300_v36 = vpack.c.bf16 %v543_v34, %v542_v33  ;;  %v545_v40 = vld [vmem:[%s4206_s1 + $0x168] sm:$0xff]  ;;  %v2859_v42 = vld [vmem:[%s2841_s21 + $0x18] sm:$0xff]  ;;  %v2255_v43 = vpack.c.bf16 %v513_v38, %v512_v37  ;;  %v514_v45 = vld [vmem:[%s4206_s1 + $0x70] sm:$0xff] }
  0x18   : > { %v242_v41 = vld [vmem:[%s2841_s21 + $0x1] sm:$0xff]  ;;  %940 = vmatprep.mubr.f32.mxu0 %v2859_v42  ;;  %v2303_v44 = vpack.c.bf16 %v545_v40, %v544_v39  ;;  %v515_v46 = vld [vmem:[%s4206_s1 + $0x78] sm:$0xff]  ;;  %v546_v47 = vld [vmem:[%s4206_s1 + $0x170] sm:$0xff] }
  0x19   : > { %2244 = vmatpush1.bf16.msra.mxu1 %v2243_v17  ;;  %715 = vmatprep.mubr.f32.mxu1 %v242_v41  ;;  %v547_v48 = vld [vmem:[%s4206_s1 + $0x178] sm:$0xff]  ;;  %v2258_v49 = vpack.c.bf16 %v515_v46, %v514_v45  ;;  %v516_v51 = vld [vmem:[%s4206_s1 + $0x80] sm:$0xff]  ;;  %v517_v52 = vld [vmem:[%s4206_s1 + $0x88] sm:$0xff] }
  0x1a   : > { %2292 = vmatpush1.bf16.msra.mxu0 %v2291_v18  ;;  %2245 = vmatprep.subr.bf16.mxu1 %v4209_v3  ;;  %v2306_v50 = vpack.c.bf16 %v547_v48, %v546_v47  ;;  %v548_v53 = vld [vmem:[%s4206_s1 + $0x180] sm:$0xff]  ;;  %v549_v54 = vld [vmem:[%s4206_s1 + $0x188] sm:$0xff]  ;;  %v2261_v55 = vpack.c.bf16 %v517_v52, %v516_v51  ;;  %v518_v57 = vld [vmem:[%s4206_s1 + $0x90] sm:$0xff] }
  0x1b   : > { %2293 = vmatprep.subr.bf16.mxu0 %v4209_v3  ;;  %v2309_v56 = vpack.c.bf16 %v549_v54, %v548_v53  ;;  %v519_v58 = vld [vmem:[%s4206_s1 + $0x98] sm:$0xff]  ;;  %v550_v59 = vld [vmem:[%s4206_s1 + $0x190] sm:$0xff]  ;;  %v520_v63 = vld [vmem:[%s4206_s1 + $0xa0] sm:$0xff] }
  0x1c   : > { %v551_v60 = vld [vmem:[%s4206_s1 + $0x198] sm:$0xff]  ;;  %v2264_v61 = vpack.c.bf16 %v519_v58, %v518_v57  ;;  %v521_v0 = vld [vmem:[%s4206_s1 + $0xa8] sm:$0xff]  ;;  %v552_v1 = vld [vmem:[%s4206_s1 + $0x1a0] sm:$0xff] }
  0x1d   : > { %2247 = vmatpush1.bf16.msra.mxu1 %v2246_v23  ;;  %v2312_v62 = vpack.c.bf16 %v551_v60, %v550_v59  ;;  %v553_v2 = vld [vmem:[%s4206_s1 + $0x1a8] sm:$0xff]  ;;  %v2267_v4 = vpack.c.bf16 %v521_v0, %v520_v63  ;;  %v522_v6 = vld [vmem:[%s4206_s1 + $0xb0] sm:$0xff]  ;;  %v523_v7 = vld [vmem:[%s4206_s1 + $0xb8] sm:$0xff] }
  0x1e   : > { %2295 = vmatpush1.bf16.msra.mxu0 %v2294_v24  ;;  %2248 = vmatprep.subr.bf16.mxu1 %v4209_v3  ;;  %v2315_v5 = vpack.c.bf16 %v553_v2, %v552_v1  ;;  %v554_v8 = vld [vmem:[%s4206_s1 + $0x1b0] sm:$0xff]  ;;  %v555_v9 = vld [vmem:[%s4206_s1 + $0x1b8] sm:$0xff]  ;;  %v2270_v10 = vpack.c.bf16 %v523_v7, %v522_v6  ;;  %v524_v12 = vld [vmem:[%s4206_s1 + $0xc0] sm:$0xff] }
  0x1f   : > { %2296 = vmatprep.subr.bf16.mxu0 %v4209_v3  ;;  %v2318_v11 = vpack.c.bf16 %v555_v9, %v554_v8  ;;  %v525_v13 = vld [vmem:[%s4206_s1 + $0xc8] sm:$0xff]  ;;  %v556_v14 = vld [vmem:[%s4206_s1 + $0x1c0] sm:$0xff]  ;;  %v526_v18 = vld [vmem:[%s4206_s1 + $0xd0] sm:$0xff] }
  0x20   : > { %v557_v15 = vld [vmem:[%s4206_s1 + $0x1c8] sm:$0xff]  ;;  %v2273_v16 = vpack.c.bf16 %v525_v13, %v524_v12  ;;  %v527_v19 = vld [vmem:[%s4206_s1 + $0xd8] sm:$0xff]  ;;  %v558_v20 = vld [vmem:[%s4206_s1 + $0x1d0] sm:$0xff] }
  0x21   : > { %2250 = vmatpush1.bf16.msra.mxu1 %v2249_v29  ;;  %v2321_v17 = vpack.c.bf16 %v557_v15, %v556_v14  ;;  %v559_v21 = vld [vmem:[%s4206_s1 + $0x1d8] sm:$0xff]  ;;  %v2276_v22 = vpack.c.bf16 %v527_v19, %v526_v18  ;;  %v528_v24 = vld [vmem:[%s4206_s1 + $0xe0] sm:$0xff]  ;;  %v529_v25 = vld [vmem:[%s4206_s1 + $0xe8] sm:$0xff] }
  0x22   : > { %2298 = vmatpush1.bf16.msra.mxu0 %v2297_v30  ;;  %2251 = vmatprep.subr.bf16.mxu1 %v4209_v3  ;;  %v2324_v23 = vpack.c.bf16 %v559_v21, %v558_v20  ;;  %v560_v26 = vld [vmem:[%s4206_s1 + $0x1e0] sm:$0xff]  ;;  %v561_v27 = vld [vmem:[%s4206_s1 + $0x1e8] sm:$0xff]  ;;  %v2279_v28 = vpack.c.bf16 %v529_v25, %v528_v24  ;;  %v530_v30 = vld [vmem:[%s4206_s1 + $0xf0] sm:$0xff] }
  0x23   : > { %2299 = vmatprep.subr.bf16.mxu0 %v4209_v3  ;;  %v2327_v29 = vpack.c.bf16 %v561_v27, %v560_v26  ;;  %v531_v31 = vld [vmem:[%s4206_s1 + $0xf8] sm:$0xff]  ;;  %v562_v32 = vld [vmem:[%s4206_s1 + $0x1f0] sm:$0xff]  ;;  %v597_v37 = vld [vmem:[%s4206_s1 + $0x308] sm:$0xff] }
  0x24   : > { %v563_v33 = vld [vmem:[%s4206_s1 + $0x1f8] sm:$0xff]  ;;  %v2282_v34 = vpack.c.bf16 %v531_v31, %v530_v30  ;;  %v564_v38 = vld [vmem:[%s4206_s1 + $0x200] sm:$0xff]  ;;  %v565_v39 = vld [vmem:[%s4206_s1 + $0x208] sm:$0xff] }
  0x25   : > { %2253 = vmatpush1.bf16.msra.mxu1 %v2252_v35  ;;  %v2330_v35 = vpack.c.bf16 %v563_v33, %v562_v32  ;;  %v210_v40 = vld [vmem:[%s2841_s21] sm:$0xff]  ;;  %v243_v45 = vld [vmem:[%s2841_s21 + $0x9] sm:$0xff]  ;;  %v567_v47 = vld [vmem:[%s4206_s1 + $0x218] sm:$0xff] }
  0x26   : > { %2301 = vmatpush1.bf16.msra.mxu0 %v2300_v36  ;;  %2254 = vmatprep.subr.bf16.mxu1 %v4209_v3  ;;  %v596_v36 = vld [vmem:[%s4206_s1 + $0x300] sm:$0xff]  ;;  %v566_v46 = vld [vmem:[%s4206_s1 + $0x210] sm:$0xff]  ;;  %v211_v51 = vld [vmem:[%s2841_s21 + $0x8] sm:$0xff] }
  0x27   : > { %2302 = vmatprep.subr.bf16.mxu0 %v4209_v3  ;;  %v3003_v41 = vpack.c.bf16 %v597_v37, %v596_v36  ;;  %v1913_v48 = vld [vmem:[%s2841_s21 + $0x20] sm:$0xff]  ;;  %v275_v52 = vld [vmem:[%s2841_s21 + $0xa] sm:$0xff]  ;;  %v2336_v54 = vpack.c.bf16 %v567_v47, %v566_v46  ;;  %v1915_v0 = vld [vmem:[%s2841_s21 + $0x38] sm:$0xff] }
  0x28   : > { %v3026_v53 = vld [vmem:[%s2841_s21 + $0x19] sm:$0xff]  ;;  %v569_v58 = vld [vmem:[%s4206_s1 + $0x228] sm:$0xff]  ;;  %v570_v2 = vld [vmem:[%s4206_s1 + $0x230] sm:$0xff] }
  0x29   : > { %2256 = vmatpush1.bf16.msra.mxu1 %v2255_v43  ;;  %v274_v43 = vld [vmem:[%s2841_s21 + $0x2] sm:$0xff]  ;;  %v603_v6 = vld [vmem:[%s4206_s1 + $0x338] sm:$0xff]  ;;  %v1917_v18 = vld [vmem:[%s2841_s21 + $0x50] sm:$0xff] }
  0x2a   : > { %2304 = vmatpush1.bf16.msra.mxu0 %v2303_v44  ;;  %2257 = vmatprep.subr.bf16.mxu1 %v4209_v3  ;;  %v2333_v44 = vpack.c.bf16 %v565_v39, %v564_v38  ;;  %v568_v57 = vld [vmem:[%s4206_s1 + $0x220] sm:$0xff]  ;;  %v601_v60 = vld [vmem:[%s4206_s1 + $0x328] sm:$0xff]  ;;  %v3077_v8 = vld [vmem:[%s2841_s21 + $0x31] sm:$0xff] }
  0x2b   : > { %2305 = vmatprep.subr.bf16.mxu0 %v4209_v3  ;;  %v600_v59 = vld [vmem:[%s4206_s1 + $0x320] sm:$0xff]  ;;  %v2339_v63 = vpack.c.bf16 %v569_v58, %v568_v57  ;;  %v1916_v9 = vld [vmem:[%s2841_s21 + $0x48] sm:$0xff]  ;;  %v3100_v15 = vld [vmem:[%s2841_s21 + $0x32] sm:$0xff] }
  0x2c   : > { %v3055_v1 = vpack.c.bf16 %v601_v60, %v600_v59  ;;  %v3074_v7 = vld [vmem:[%s2841_s21 + $0x22] sm:$0xff]  ;;  %v574_v20 = vld [vmem:[%s4206_s1 + $0x250] sm:$0xff]  ;;  %v575_v21 = vld [vmem:[%s4206_s1 + $0x258] sm:$0xff] }
  0x2d   : > { %2259 = vmatpush1.bf16.msra.mxu1 %v2258_v49  ;;  %v598_v49 = vld [vmem:[%s4206_s1 + $0x310] sm:$0xff]  ;;  %v573_v12 = vld [vmem:[%s4206_s1 + $0x248] sm:$0xff]  ;;  %v604_v13 = vld [vmem:[%s4206_s1 + $0x340] sm:$0xff]  ;;  %v2348_v26 = vpack.c.bf16 %v575_v21, %v574_v20 }
  0x2e   : > { %2307 = vmatpush1.bf16.msra.mxu0 %v2306_v50  ;;  %2260 = vmatprep.subr.bf16.mxu1 %v4209_v3  ;;  %v599_v50 = vld [vmem:[%s4206_s1 + $0x318] sm:$0xff]  ;;  %v605_v14 = vld [vmem:[%s4206_s1 + $0x348] sm:$0xff]  ;;  %v1918_v27 = vld [vmem:[%s2841_s21 + $0x60] sm:$0xff] }
  0x2f   : > { %2308 = vmatprep.subr.bf16.mxu0 %v4209_v3  ;;  %v3108_v19 = vpack.c.bf16 %v605_v14, %v604_v13  ;;  %v3126_v24 = vld [vmem:[%s2841_s21 + $0x3a] sm:$0xff]  ;;  %v3129_v25 = vld [vmem:[%s2841_s21 + $0x49] sm:$0xff] }
  0x30   : > { %v577_v30 = vld [vmem:[%s4206_s1 + $0x268] sm:$0xff]  ;;  %v608_v31 = vld [vmem:[%s4206_s1 + $0x360] sm:$0xff]  ;;  %v578_v38 = vld [vmem:[%s4206_s1 + $0x270] sm:$0xff] }
  0x31   : > { %2262 = vmatpush1.bf16.msra.mxu1 %v2261_v55  ;;  %v1914_v55 = vld [vmem:[%s2841_s21 + $0x30] sm:$0xff]  ;;  %v609_v32 = vld [vmem:[%s4206_s1 + $0x368] sm:$0xff]  ;;  %v579_v39 = vld [vmem:[%s4206_s1 + $0x278] sm:$0xff] }
  0x32   : > { %2310 = vmatpush1.bf16.msra.mxu0 %v2309_v56  ;;  %2263 = vmatprep.subr.bf16.mxu1 %v4209_v3  ;;  %v3030_v56 = vpack.c.bf16 %v599_v50, %v598_v49  ;;  %v3152_v33 = vld [vmem:[%s2841_s21 + $0x4a] sm:$0xff]  ;;  %v3160_v37 = vpack.c.bf16 %v609_v32, %v608_v31  ;;  %v2354_v46 = vpack.c.bf16 %v579_v39, %v578_v38  ;;  %v1920_v47 = vld [vmem:[%s2841_s21 + $0x78] sm:$0xff]  ;;  %v580_v49 = vld [vmem:[%s4206_s1 + $0x280] sm:$0xff] }
  0x33   : > { %2311 = vmatprep.subr.bf16.mxu0 %v4209_v3  ;;  %v1919_v36 = vld [vmem:[%s2841_s21 + $0x68] sm:$0xff]  ;;  %v1921_v58 = vld [vmem:[%s2841_s21 + $0x80] sm:$0xff]  ;;  %v582_v60 = vld [vmem:[%s4206_s1 + $0x290] sm:$0xff] }
  0x34   : > { %v581_v50 = vld [vmem:[%s4206_s1 + $0x288] sm:$0xff]  ;;  %v616_v13 = vld [vmem:[%s4206_s1 + $0x3a0] sm:$0xff]  ;;  %v3265_v21 = vld [vmem:[%s2841_s21 + $0x98] sm:$0xff] }
  0x35   : > { %2265 = vmatpush1.bf16.msra.mxu1 %v2264_v61  ;;  %v3047_v61 = vld [vmem:[%s2841_s21 + $0x1a] sm:$0xff]  ;;  %v2357_v57 = vpack.c.bf16 %v581_v50, %v580_v49  ;;  %v617_v14 = vld [vmem:[%s4206_s1 + $0x3a8] sm:$0xff]  ;;  %v3291_v31 = vld [vmem:[%s2841_s21 + $0x91] sm:$0xff] }
  0x36   : > { %2313 = vmatpush1.bf16.msra.mxu0 %v2312_v62  ;;  %2266 = vmatprep.subr.bf16.mxu1 %v4209_v3  ;;  %v3050_v62 = vld [vmem:[%s2841_s21 + $0x21] sm:$0xff]  ;;  %v3323_v50 = vld [vmem:[%s2841_s21 + $0xb0] sm:$0xff] }
  0x37   : > { %2314 = vmatprep.subr.bf16.mxu0 %v4209_v3  ;;  %v588_v38 = vld [vmem:[%s4206_s1 + $0x2c0] sm:$0xff]  ;;  %v589_v39 = vld [vmem:[%s4206_s1 + $0x2c8] sm:$0xff] }
  0x38   : > { %v2369_v49 = vpack.c.bf16 %v589_v39, %v588_v38  ;;  %v594_v38 = vld [vmem:[%s4206_s1 + $0x2f0] sm:$0xff]  ;;  %v595_v39 = vld [vmem:[%s4206_s1 + $0x2f8] sm:$0xff] }
  0x39   : > { %2268 = vmatpush1.bf16.msra.mxu1 %v2267_v4  ;;  %v571_v4 = vld [vmem:[%s4206_s1 + $0x238] sm:$0xff] }
  0x3a   : > { %2316 = vmatpush1.bf16.msra.mxu0 %v2315_v5  ;;  %2269 = vmatprep.subr.bf16.mxu1 %v4209_v3  ;;  %v602_v5 = vld [vmem:[%s4206_s1 + $0x330] sm:$0xff] }
  0x3b   : > { %2317 = vmatprep.subr.bf16.mxu0 %v4209_v3 }
  0x3d   : > { %2271 = vmatpush1.bf16.msra.mxu1 %v2270_v10  ;;  %v3082_v10 = vpack.c.bf16 %v603_v6, %v602_v5  ;;  %v3233_v5 = vld [vmem:[%s2841_s21 + $0x79] sm:$0xff] }
  0x3e   : > { %2319 = vmatpush1.bf16.msra.mxu0 %v2318_v11  ;;  %2272 = vmatprep.subr.bf16.mxu1 %v4209_v3  ;;  %v572_v11 = vld [vmem:[%s4206_s1 + $0x240] sm:$0xff] }
  0x3f   : > { %2320 = vmatprep.subr.bf16.mxu0 %v4209_v3 }
  0x41   : > { %2274 = vmatpush1.bf16.msra.mxu1 %v2273_v16  ;;  %v3103_v16 = vld [vmem:[%s2841_s21 + $0x39] sm:$0xff] }
  0x42   : > { %2322 = vmatpush1.bf16.msra.mxu0 %v2321_v17  ;;  %2275 = vmatprep.subr.bf16.mxu1 %v4209_v3  ;;  %v2345_v17 = vpack.c.bf16 %v573_v12, %v572_v11  ;;  %v584_v11 = vld [vmem:[%s4206_s1 + $0x2a0] sm:$0xff]  ;;  %v585_v12 = vld [vmem:[%s4206_s1 + $0x2a8] sm:$0xff] }
  0x43   : > { %2323 = vmatprep.subr.bf16.mxu0 %v4209_v3  ;;  %v2363_v20 = vpack.c.bf16 %v585_v12, %v584_v11  ;;  %v592_v12 = vld [vmem:[%s4206_s1 + $0x2e0] sm:$0xff] }
  0x45   : > { %2277 = vmatpush1.bf16.msra.mxu1 %v2276_v22  ;;  %v606_v22 = vld [vmem:[%s4206_s1 + $0x350] sm:$0xff] }
  0x46   : > { %2325 = vmatpush1.bf16.msra.mxu0 %v2324_v23  ;;  %2278 = vmatprep.subr.bf16.mxu1 %v4209_v3  ;;  %v607_v23 = vld [vmem:[%s4206_s1 + $0x358] sm:$0xff] }
  0x47   : > { %2326 = vmatprep.subr.bf16.mxu0 %v4209_v3 }
  0x49   : > { %2280 = vmatpush1.bf16.msra.mxu1 %v2279_v28  ;;  %v3134_v28 = vpack.c.bf16 %v607_v23, %v606_v22  ;;  %v3269_v22 = vpack.c.bf16 %v617_v14, %v616_v13  ;;  %v586_v23 = vld [vmem:[%s4206_s1 + $0x2b0] sm:$0xff]  ;;  %v593_v13 = vld [vmem:[%s4206_s1 + $0x2e8] sm:$0xff]  ;;  %v624_v14 = vld [vmem:[%s4206_s1 + $0x3e0] sm:$0xff] }
  0x4a   : > { %2328 = vmatpush1.bf16.msra.mxu0 %v2327_v29  ;;  %2281 = vmatprep.subr.bf16.mxu1 %v4209_v3  ;;  %v576_v29 = vld [vmem:[%s4206_s1 + $0x260] sm:$0xff] }
  0x4b   : > { %2329 = vmatprep.subr.bf16.mxu0 %v4209_v3  ;;  %4268 = vst [vmem:[#allocation2_spill] sm:$0xff] %v3269_v22 }
  0x4d   : > { %2283 = vmatpush1.bf16.msra.mxu1 %v2282_v34  ;;  %v3155_v34 = vld [vmem:[%s2841_s21 + $0x51] sm:$0xff] }
  0x4e   : > { %2331 = vmatpush1.bf16.msra.mxu0 %v2330_v35  ;;  %2460 = vmatprep.subr.bf16.mxu1 %v4209_v3  ;;  %v2351_v35 = vpack.c.bf16 %v577_v30, %v576_v29  ;;  %v619_v29 = vld [vmem:[%s4206_s1 + $0x3b8] sm:$0xff]  ;;  %v3288_v30 = vld [vmem:[%s2841_s21 + $0x82] sm:$0xff] }
  0x4f   : > { %2332 = vmatprep.subr.bf16.mxu0 %v4209_v3 }
  0x50   : > { %716 = vmatmul.mubr.f32.vlgmr.msra.gmra.mrb[0].mxu1 %v210_v40  ;;  %v610_v40 = vld [vmem:[%s4206_s1 + $0x370] sm:$0xff] }
  0x51   : > { %941 = vmatmul.mubr.f32.vlgmr.msra.gmra.mrb[0].mxu0 %v274_v43  ;;  %2476 = vmatpush1.bf16.msra.mxu1 %v3003_v41  ;;  %v611_v43 = vld [vmem:[%s4206_s1 + $0x378] sm:$0xff] }
  0x52   : > { %2334 = vmatpush1.bf16.msra.mxu0 %v2333_v44  ;;  %720 = vmatprep.mubr.f32.mxu1 %v243_v45  ;;  %v3178_v44 = vld [vmem:[%s2841_s21 + $0x52] sm:$0xff]  ;;  %v3181_v45 = vld [vmem:[%s2841_s21 + $0x61] sm:$0xff] }
  0x53   : > { %945 = vmatprep.mubr.f32.mxu0 %v1913_v48  ;;  %2335 = vmatprep.subr.bf16.mxu0 %v4209_v3 }
  0x54   : > { %721 = vmatmul.mubr.f32.gmra.mrb[2].mxu1 %v211_v51  ;;  %2461 = vmatprep.subr.bf16.mxu1 %v4209_v3  ;;  %v612_v51 = vld [vmem:[%s4206_s1 + $0x380] sm:$0xff] }
  0x55   : > { %946 = vmatmul.mubr.f32.gmra.mrb[2].mxu0 %v275_v52  ;;  %725 = vmatprep.mubr.f32.mxu1 %v3026_v53  ;;  %v613_v52 = vld [vmem:[%s4206_s1 + $0x388] sm:$0xff] }
  0x56   : > { %950 = vmatprep.mubr.f32.mxu0 %v1914_v55  ;;  %2337 = vmatpush1.bf16.msra.mxu0 %v2336_v54  ;;  %v3204_v54 = vld [vmem:[%s2841_s21 + $0x62] sm:$0xff]  ;;  %v3212_v59 = vpack.c.bf16 %v613_v52, %v612_v51  ;;  %v590_v52 = vld [vmem:[%s4206_s1 + $0x2d0] sm:$0xff] }
  0x57   : > { %2477 = vmatpush1.bf16.msra.mxu1 %v3030_v56  ;;  %2338 = vmatprep.subr.bf16.mxu0 %v4209_v3 }
  0x58   : > { %726 = vmatmul.mubr.f32.gmra.mrb[4].mxu1 %v2859_v42  ;;  %2462 = vmatprep.subr.bf16.mxu1 %v4209_v3  ;;  %v2342_v42 = vpack.c.bf16 %v571_v4, %v570_v2  ;;  %v615_v2 = vld [vmem:[%s4206_s1 + $0x398] sm:$0xff]  ;;  %v3230_v4 = vld [vmem:[%s2841_s21 + $0x6a] sm:$0xff] }
  0x59   : > { %951 = vmatmul.mubr.f32.gmra.mrb[4].mxu0 %v3047_v61  ;;  %730 = vmatprep.mubr.f32.mxu1 %v3050_v62 }
  0x5a   : > { %955 = vmatprep.mubr.f32.mxu0 %v1915_v0  ;;  %2340 = vmatpush1.bf16.msra.mxu0 %v2339_v63  ;;  %v583_v63 = vld [vmem:[%s4206_s1 + $0x298] sm:$0xff] }
  0x5b   : > { %2478 = vmatpush1.bf16.msra.mxu1 %v3055_v1  ;;  %2341 = vmatprep.subr.bf16.mxu0 %v4209_v3  ;;  %v2360_v6 = vpack.c.bf16 %v583_v63, %v582_v60  ;;  %v623_v60 = vld [vmem:[%s4206_s1 + $0x3d8] sm:$0xff] }
  0x5c   : > { %731 = vmatmul.mubr.f32.gmra.mrb[6].mxu1 %v1913_v48  ;;  %2463 = vmatprep.subr.bf16.mxu1 %v4209_v3  ;;  %v3186_v48 = vpack.c.bf16 %v611_v43, %v610_v40  ;;  %v620_v40 = vld [vmem:[%s4206_s1 + $0x3c0] sm:$0xff]  ;;  %v621_v43 = vld [vmem:[%s4206_s1 + $0x3c8] sm:$0xff] }
  0x5d   : > { %956 = vmatmul.mubr.f32.gmra.mrb[6].mxu0 %v3074_v7  ;;  %735 = vmatprep.mubr.f32.mxu1 %v3077_v8  ;;  %v3327_v51 = vpack.c.bf16 %v621_v43, %v620_v40  ;;  %v3347_v63 = vld [vmem:[%s2841_s21 + $0x9a] sm:$0xff]  ;;  %v626_v40 = vld [vmem:[%s4206_s1 + $0x3f0] sm:$0xff] }
  0x5e   : > { %960 = vmatprep.mubr.f32.mxu0 %v1916_v9  ;;  %2343 = vmatpush1.bf16.msra.mxu0 %v2342_v42  ;;  %v3236_v42 = vld [vmem:[%s2841_s21 + $0x90] sm:$0xff]  ;;  %4271 = vst [vmem:[#allocation5_spill] sm:$0xff] %v3347_v63  ;;  %v627_v43 = vld [vmem:[%s4206_s1 + $0x3f8] sm:$0xff] }
  0x5f   : > { %2479 = vmatpush1.bf16.msra.mxu1 %v3082_v10  ;;  %2344 = vmatprep.subr.bf16.mxu0 %v4209_v3  ;;  %4270 = vst [vmem:[#allocation4_spill] sm:$0xff] %v3327_v51 }
  0x60   : > { %736 = vmatmul.mubr.f32.gmra.mrb[8].mxu1 %v1914_v55  ;;  %2464 = vmatprep.subr.bf16.mxu1 %v4209_v3  ;;  %v3207_v55 = vld [vmem:[%s2841_s21 + $0x69] sm:$0xff] }
  0x61   : > { %961 = vmatmul.mubr.f32.gmra.mrb[8].mxu0 %v3100_v15  ;;  %740 = vmatprep.mubr.f32.mxu1 %v3103_v16 }
  0x62   : > { %965 = vmatprep.mubr.f32.mxu0 %v1917_v18  ;;  %2346 = vmatpush1.bf16.msra.mxu0 %v2345_v17  ;;  %v3259_v17 = vld [vmem:[%s2841_s21 + $0x7a] sm:$0xff] }
  0x63   : > { %2480 = vmatpush1.bf16.msra.mxu1 %v3108_v19  ;;  %2347 = vmatprep.subr.bf16.mxu0 %v4209_v3 }
  0x64   : > { %741 = vmatmul.mubr.f32.gmra.mrb[10].mxu1 %v1915_v0  ;;  %2465 = vmatprep.subr.bf16.mxu1 %v4209_v3  ;;  %v614_v0 = vld [vmem:[%s4206_s1 + $0x390] sm:$0xff] }
  0x65   : > { %966 = vmatmul.mubr.f32.gmra.mrb[10].mxu0 %v3126_v24  ;;  %745 = vmatprep.mubr.f32.mxu1 %v3129_v25 }
  0x66   : > { %970 = vmatprep.mubr.f32.mxu0 %v1918_v27  ;;  %2349 = vmatpush1.bf16.msra.mxu0 %v2348_v26  ;;  %v587_v26 = vld [vmem:[%s4206_s1 + $0x2b8] sm:$0xff] }
  0x67   : > { %2481 = vmatpush1.bf16.msra.mxu1 %v3134_v28  ;;  %2350 = vmatprep.subr.bf16.mxu0 %v4209_v3  ;;  %v2366_v32 = vpack.c.bf16 %v587_v26, %v586_v23  ;;  %v3377_v23 = vld [vmem:[%s2841_s21 + $0xaa] sm:$0xff] }
  0x68   : > { %746 = vmatmul.mubr.f32.gmra.mrb[12].mxu1 %v1916_v9  ;;  %2466 = vmatprep.subr.bf16.mxu1 %v4209_v3  ;;  %v3240_v9 = vpack.c.bf16 %v615_v2, %v614_v0  ;;  %v3350_v0 = vld [vmem:[%s2841_s21 + $0xa9] sm:$0xff]  ;;  %4273 = vst [vmem:[#allocation7_spill] sm:$0xff] %v3377_v23  ;;  %v3380_v26 = vld [vmem:[%s2841_s21 + $0xb1] sm:$0xff] }
  0x69   : > { %971 = vmatmul.mubr.f32.gmra.mrb[12].mxu0 %v3152_v33  ;;  %750 = vmatprep.mubr.f32.mxu1 %v3155_v34 }
  0x6a   : > { %975 = vmatprep.mubr.f32.mxu0 %v1919_v36  ;;  %2352 = vmatpush1.bf16.msra.mxu0 %v2351_v35  ;;  %v3294_v35 = vld [vmem:[%s2841_s21 + $0xa8] sm:$0xff] }
  0x6b   : > { %2482 = vmatpush1.bf16.msra.mxu1 %v3160_v37  ;;  %2353 = vmatprep.subr.bf16.mxu0 %v4209_v3 }
  0x6c   : > { %751 = vmatmul.mubr.f32.gmra.mrb[14].mxu1 %v1917_v18  ;;  %2467 = vmatprep.subr.bf16.mxu1 %v4209_v3  ;;  %v3262_v18 = vld [vmem:[%s2841_s21 + $0x81] sm:$0xff] }
  0x6d   : > { %976 = vmatmul.mubr.f32.gmra.mrb[14].mxu0 %v3178_v44  ;;  %755 = vmatprep.mubr.f32.mxu1 %v3181_v45 }
  0x6e   : > { %980 = vmatprep.mubr.f32.mxu0 %v1920_v47  ;;  %2355 = vmatpush1.bf16.msra.mxu0 %v2354_v46  ;;  %v3317_v46 = vld [vmem:[%s2841_s21 + $0x92] sm:$0xff] }
  0x6f   : > { %2483 = vmatpush1.bf16.msra.mxu1 %v3186_v48  ;;  %2356 = vmatprep.subr.bf16.mxu0 %v4209_v3 }
  0x70   : > { %756 = vmatmul.mubr.f32.gmra.mrb[16].mxu1 %v1918_v27  ;;  %2468 = vmatprep.subr.bf16.mxu1 %v4209_v3  ;;  %v618_v27 = vld [vmem:[%s4206_s1 + $0x3b0] sm:$0xff] }
  0x71   : > { %981 = vmatmul.mubr.f32.gmra.mrb[16].mxu0 %v3204_v54  ;;  %760 = vmatprep.mubr.f32.mxu1 %v3207_v55 }
  0x72   : > { %985 = vmatprep.mubr.f32.mxu0 %v1921_v58  ;;  %2358 = vmatpush1.bf16.msra.mxu0 %v2357_v57  ;;  %v591_v57 = vld [vmem:[%s4206_s1 + $0x2d8] sm:$0xff] }
  0x73   : > { %2484 = vmatpush1.bf16.msra.mxu1 %v3212_v59  ;;  %2359 = vmatprep.subr.bf16.mxu0 %v4209_v3  ;;  %v2372_v2 = vpack.c.bf16 %v591_v57, %v590_v52  ;;  %v629_v52 = vld [vmem:[%s4206_s1 + $0x408] sm:$0xff]  ;;  %v3413_v57 = vld [vmem:[%s2841_s21 + $0xb2] sm:$0xff] }
  0x74   : > { %761 = vmatmul.mubr.f32.gmra.mrb[18].mxu1 %v1919_v36  ;;  %2469 = vmatprep.subr.bf16.mxu1 %v4209_v3  ;;  %v3298_v36 = vpack.c.bf16 %v619_v29, %v618_v27  ;;  %v2375_v27 = vpack.c.bf16 %v593_v13, %v592_v12  ;;  %v3383_v29 = vld [vmem:[%s2841_s21 + $0xc8] sm:$0xff]  ;;  %4275 = vst [vmem:[#allocation9_spill] sm:$0xff] %v3413_v57 }
  0x75   : > { %986 = vmatmul.mubr.f32.gmra.mrb[18].mxu0 %v3230_v4  ;;  %765 = vmatprep.mubr.f32.mxu1 %v3233_v5  ;;  %v3423_v12 = vpack.c.bf16 %v627_v43, %v626_v40  ;;  %v3455_v40 = vld [vmem:[%s2841_s21 + $0xf0] sm:$0xff]  ;;  %v3462_v43 = vld [vmem:[%s2841_s21 + $0xda] sm:$0xff] }
  0x76   : > { %990 = vmatprep.mubr.f32.mxu0 %v3236_v42  ;;  %2361 = vmatpush1.bf16.msra.mxu0 %v2360_v6  ;;  %4269 = vst [vmem:[#allocation3_spill] sm:$0xff] %v3298_v36  ;;  %v3353_v6 = vld [vmem:[%s2841_s21 + $0xc0] sm:$0xff]  ;;  %4279 = vst [vmem:[#allocation13_spill] sm:$0xff] %v3462_v43 }
  0x77   : > { %2485 = vmatpush1.bf16.msra.mxu1 %v3240_v9  ;;  %2362 = vmatprep.subr.bf16.mxu0 %v4209_v3  ;;  %4276 = vst [vmem:[#allocation10_spill] sm:$0xff] %v3423_v12 }
  0x78   : > { %766 = vmatmul.mubr.f32.gmra.mrb[20].mxu1 %v1920_v47  ;;  %2470 = vmatprep.subr.bf16.mxu1 %v4209_v3  ;;  %v3320_v47 = vld [vmem:[%s2841_s21 + $0x99] sm:$0xff] }
  0x79   : > { %991 = vmatmul.mubr.f32.gmra.mrb[20].mxu0 %v3259_v17  ;;  %770 = vmatprep.mubr.f32.mxu1 %v3262_v18 }
  0x7a   : > { %995 = vmatprep.mubr.f32.mxu0 %v3265_v21  ;;  %2364 = vmatpush1.bf16.msra.mxu0 %v2363_v20  ;;  %v625_v20 = vld [vmem:[%s4206_s1 + $0x3e8] sm:$0xff] }
  0x7b   : > { %2486 = vmatpush1.bf16.msra.mxu1 %v3269_v22  ;;  %2365 = vmatprep.subr.bf16.mxu0 %v4209_v3  ;;  %v3543_v22 = vld [vmem:[%s2841_s21 + $0x129] sm:$0xff] }
  0x7c   : > { %771 = vmatmul.mubr.f32.gmra.mrb[22].mxu1 %v1921_v58  ;;  %2471 = vmatprep.subr.bf16.mxu1 %v4209_v3  ;;  %v622_v58 = vld [vmem:[%s4206_s1 + $0x3d0] sm:$0xff]  ;;  %4291 = vst [vmem:[#allocation25_spill] sm:$0xff] %v3543_v22 }
  0x7d   : > { %996 = vmatmul.mubr.f32.gmra.mrb[22].mxu0 %v3288_v30  ;;  %775 = vmatprep.mubr.f32.mxu1 %v3291_v31  ;;  %v3357_v11 = vpack.c.bf16 %v623_v60, %v622_v58  ;;  %v3416_v58 = vld [vmem:[%s2841_s21 + $0xc1] sm:$0xff]  ;;  %v2378_v60 = vpack.c.bf16 %v595_v39, %v594_v38  ;;  %v3449_v38 = vld [vmem:[%s2841_s21 + $0xca] sm:$0xff]  ;;  %v3452_v39 = vld [vmem:[%s2841_s21 + $0xd9] sm:$0xff] }
  0x7e   : > { %1000 = vmatprep.mubr.f32.mxu0 %v3294_v35  ;;  %2367 = vmatpush1.bf16.msra.mxu0 %v2366_v32  ;;  %v3387_v32 = vpack.c.bf16 %v625_v20, %v624_v14  ;;  %v3433_v14 = vld [vmem:[%s2841_s21 + $0xc2] sm:$0xff]  ;;  %4278 = vst [vmem:[#allocation12_spill] sm:$0xff] %v3449_v38 }
  0x7f   : > { %2487 = vmatpush1.bf16.msra.mxu1 %v3298_v36  ;;  %2368 = vmatprep.subr.bf16.mxu0 %v4209_v3  ;;  %4272 = vst [vmem:[#allocation6_spill] sm:$0xff] %v3357_v11  ;;  %4277 = vst [vmem:[#allocation11_spill] sm:$0xff] %v3433_v14  ;;  %v3436_v20 = vld [vmem:[%s2841_s21 + $0xc9] sm:$0xff]  ;;  %v3530_v36 = vld [vmem:[%s2841_s21 + $0x121] sm:$0xff] }
  0x80   : > { %776 = vmatmul.mubr.f32.gmra.mrb[24].mxu1 %v3236_v42  ;;  %2472 = vmatprep.subr.bf16.mxu1 %v4209_v3  ;;  %4274 = vst [vmem:[#allocation8_spill] sm:$0xff] %v3387_v32  ;;  %4288 = vst [vmem:[#allocation22_spill] sm:$0xff] %v3530_v36 }
  0x81   : > { %1001 = vmatmul.mubr.f32.gmra.mrb[24].mxu0 %v3317_v46  ;;  %780 = vmatprep.mubr.f32.mxu1 %v3320_v47 }
  0x82   : > { %1005 = vmatprep.mubr.f32.mxu0 %v3323_v50  ;;  %2370 = vmatpush1.bf16.msra.mxu0 %v2369_v49  ;;  %v628_v49 = vld [vmem:[%s4206_s1 + $0x400] sm:$0xff] }
  0x83   : > { %2488 = vmatpush1.bf16.msra.mxu1 %v3327_v51  ;;  %2371 = vmatprep.subr.bf16.mxu0 %v4209_v3  ;;  %v3427_v13 = vpack.c.bf16 %v629_v52, %v628_v49  ;;  %v3465_v49 = vld [vmem:[%s2841_s21 + $0xe1] sm:$0xff]  ;;  %v3468_v52 = vld [vmem:[%s2841_s21 + $0xf8] sm:$0xff] }
  0x84   : > { %781 = vmatmul.mubr.f32.gmra.mrb[26].mxu1 %v3265_v21  ;;  %2473 = vmatprep.subr.bf16.mxu1 %v4209_v3  ;;  %v3517_v51 = vld [vmem:[%s2841_s21 + $0x111] sm:$0xff] }
  0x85   : > { %1006 = vmatmul.mubr.f32.gmra.mrb[26].mxu0 %v3347_v63  ;;  %785 = vmatprep.mubr.f32.mxu1 %v3350_v0  ;;  %v3546_v63 = vld [vmem:[%s2841_s21 + $0x140] sm:$0xff] }
  0x86   : > { %1010 = vmatprep.mubr.f32.mxu0 %v3353_v6  ;;  %2373 = vmatpush1.bf16.msra.mxu0 %v2372_v2  ;;  %v3419_v2 = vld [vmem:[%s2841_s21 + $0xd8] sm:$0xff]  ;;  %4292 = vst [vmem:[#allocation26_spill] sm:$0xff] %v3546_v63 }
  0x87   : > { %2489 = vmatpush1.bf16.msra.mxu1 %v3357_v11  ;;  %2374 = vmatprep.subr.bf16.mxu0 %v4209_v3  ;;  %v3504_v11 = vld [vmem:[%s2841_s21 + $0x109] sm:$0xff] }
  0x88   : > { %786 = vmatmul.mubr.f32.gmra.mrb[28].mxu1 %v3294_v35  ;;  %2474 = vmatprep.subr.bf16.mxu1 %v4209_v3 }
  0x89   : > { %1011 = vmatmul.mubr.f32.gmra.mrb[28].mxu0 %v3377_v23  ;;  %790 = vmatprep.mubr.f32.mxu1 %v3380_v26  ;;  %v3533_v23 = vld [vmem:[%s2841_s21 + $0x138] sm:$0xff] }
  0x8a   : > { %1015 = vmatprep.mubr.f32.mxu0 %v3383_v29  ;;  %2376 = vmatpush1.bf16.msra.mxu0 %v2375_v27  ;;  %v3439_v27 = vld [vmem:[%s2841_s21 + $0xe0] sm:$0xff]  ;;  %4289 = vst [vmem:[#allocation23_spill] sm:$0xff] %v3533_v23 }
  0x8b   : > { %2490 = vmatpush1.bf16.msra.mxu1 %v3387_v32  ;;  %2377 = vmatprep.subr.bf16.mxu0 %v4209_v3  ;;  %v3491_v32 = vld [vmem:[%s2841_s21 + $0xf9] sm:$0xff] }
  0x8c   : > { %791 = vmatmul.mubr.f32.gmra.mrb[30].mxu1 %v3323_v50  ;;  %2475 = vmatprep.subr.bf16.mxu1 %v4209_v3 }
  0x8d   : > { %1016 = vmatmul.mubr.f32.gmra.mrb[30].mxu0 %v3413_v57  ;;  %795 = vmatprep.mubr.f32.mxu1 %v3416_v58  ;;  %v3520_v57 = vld [vmem:[%s2841_s21 + $0x128] sm:$0xff] }
  0x8e   : > { %1020 = vmatprep.mubr.f32.mxu0 %v3419_v2  ;;  %2379 = vmatpush1.bf16.msra.mxu0 %v2378_v60  ;;  %v3475_v60 = vld [vmem:[%s2841_s21 + $0xe2] sm:$0xff]  ;;  %4286 = vst [vmem:[#allocation20_spill] sm:$0xff] %v3520_v57 }
  0x8f   : > { %2491 = vmatpush1.bf16.msra.mxu1 %v3423_v12  ;;  %2380 = vmatprep.subr.bf16.mxu0 %v4209_v3  ;;  %4280 = vst [vmem:[#allocation14_spill] sm:$0xff] %v3475_v60  ;;  %v3478_v3 = vld [vmem:[%s2841_s21 + $0xf1] sm:$0xff]  ;;  %v3481_v12 = vld [vmem:[%s2841_s21 + $0x108] sm:$0xff] }
  0x90   : > { %796 = vmatmul.mubr.f32.gmra.mrb[32].mxu1 %v3353_v6  ;;  %2429 = vmatprep.subr.bf16.mxu1 %v3427_v13 }
  0x91   : > { %1021 = vmatmul.mubr.f32.gmra.mrb[32].mxu0 %v3433_v14  ;;  %800 = vmatprep.mubr.f32.mxu1 %v3436_v20  ;;  %v3507_v14 = vld [vmem:[%s2841_s21 + $0x120] sm:$0xff] }
  0x92   : > { %1025 = vmatprep.mubr.f32.mxu0 %v3439_v27  ;;  %4284 = vst [vmem:[#allocation18_spill] sm:$0xff] %v3507_v14 }
  0x94   : > { %801 = vmatmul.mubr.f32.gmra.mrb[34].mxu1 %v3383_v29 }
  0x95   : > { %1026 = vmatmul.mubr.f32.gmra.mrb[34].mxu0 %v3449_v38  ;;  %805 = vmatprep.mubr.f32.mxu1 %v3452_v39  ;;  %v3494_v38 = vld [vmem:[%s2841_s21 + $0x110] sm:$0xff] }
  0x96   : > { %1030 = vmatprep.mubr.f32.mxu0 %v3455_v40  ;;  %4282 = vst [vmem:[#allocation16_spill] sm:$0xff] %v3494_v38 }
  0x98   : > { %806 = vmatmul.mubr.f32.gmra.mrb[36].mxu1 %v3419_v2 }
  0x99   : > { %1031 = vmatmul.mubr.f32.gmra.mrb[36].mxu0 %v3462_v43  ;;  %810 = vmatprep.mubr.f32.mxu1 %v3465_v49  ;;  %v3488_v43 = vld [vmem:[%s2841_s21 + $0xf2] sm:$0xff] }
  0x9a   : > { %1035 = vmatprep.mubr.f32.mxu0 %v3468_v52  ;;  %4281 = vst [vmem:[#allocation15_spill] sm:$0xff] %v3488_v43 }
  0x9c   : > { %811 = vmatmul.mubr.f32.gmra.mrb[38].mxu1 %v3439_v27 }
  0x9d   : > { %1036 = vmatmul.mubr.f32.gmra.mrb[38].mxu0 %v3475_v60  ;;  %815 = vmatprep.mubr.f32.mxu1 %v3478_v3  ;;  %v3501_v60 = vld [vmem:[%s2841_s21 + $0xfa] sm:$0xff] }
  0x9e   : > { %1040 = vmatprep.mubr.f32.mxu0 %v3481_v12  ;;  %4283 = vst [vmem:[#allocation17_spill] sm:$0xff] %v3501_v60 }
  0xa0   : > { %816 = vmatmul.mubr.f32.gmra.mrb[40].mxu1 %v3455_v40 }
  0xa1   : > { %1041 = vmatmul.mubr.f32.gmra.mrb[40].mxu0 %v3488_v43  ;;  %820 = vmatprep.mubr.f32.mxu1 %v3491_v32  ;;  %v3514_v43 = vld [vmem:[%s2841_s21 + $0x10a] sm:$0xff] }
  0xa2   : > { %1045 = vmatprep.mubr.f32.mxu0 %v3494_v38  ;;  %4285 = vst [vmem:[#allocation19_spill] sm:$0xff] %v3514_v43 }
  0xa4   : > { %821 = vmatmul.mubr.f32.gmra.mrb[42].mxu1 %v3468_v52 }
  0xa5   : > { %1046 = vmatmul.mubr.f32.gmra.mrb[42].mxu0 %v3501_v60  ;;  %825 = vmatprep.mubr.f32.mxu1 %v3504_v11  ;;  %v3527_v60 = vld [vmem:[%s2841_s21 + $0x112] sm:$0xff] }
  0xa6   : > { %1050 = vmatprep.mubr.f32.mxu0 %v3507_v14  ;;  %4287 = vst [vmem:[#allocation21_spill] sm:$0xff] %v3527_v60 }
  0xa8   : > { %826 = vmatmul.mubr.f32.gmra.mrb[44].mxu1 %v3481_v12 }
  0xa9   : > { %1051 = vmatmul.mubr.f32.gmra.mrb[44].mxu0 %v3514_v43  ;;  %830 = vmatprep.mubr.f32.mxu1 %v3517_v51  ;;  %v3540_v43 = vld [vmem:[%s2841_s21 + $0x122] sm:$0xff] }
  0xaa   : > { %1055 = vmatprep.mubr.f32.mxu0 %v3520_v57  ;;  %4290 = vst [vmem:[#allocation24_spill] sm:$0xff] %v3540_v43 }
  0xac   : > { %831 = vmatmul.mubr.f32.gmra.mrb[46].mxu1 %v3494_v38  ;;  %v3559_v38 = vld [vmem:[%s2841_s21 + $0x150] sm:$0xff] }
  0xad   : > { %1056 = vmatmul.mubr.f32.gmra.mrb[46].mxu0 %v3527_v60  ;;  %835 = vmatprep.mubr.f32.mxu1 %v3530_v36  ;;  %v3553_v60 = vld [vmem:[%s2841_s21 + $0x12a] sm:$0xff]  ;;  %v3556_v36 = vld [vmem:[%s2841_s21 + $0x139] sm:$0xff]  ;;  %4295 = vst [vmem:[#allocation29_spill] sm:$0xff] %v3559_v38 }
  0xae   : > { %1060 = vmatprep.mubr.f32.mxu0 %v3533_v23  ;;  %4293 = vst [vmem:[#allocation27_spill] sm:$0xff] %v3553_v60  ;;  %4294 = vst [vmem:[#allocation28_spill] sm:$0xff] %v3556_v36 }
  0xb0   : > { %836 = vmatmul.mubr.f32.gmra.mrb[48].mxu1 %v3507_v14  ;;  %v3572_v14 = vld [vmem:[%s2841_s21 + $0x158] sm:$0xff] }
  0xb1   : > { %1061 = vmatmul.mubr.f32.gmra.mrb[48].mxu0 %v3540_v43  ;;  %840 = vmatprep.mubr.f32.mxu1 %v3543_v22  ;;  %v3566_v43 = vld [vmem:[%s2841_s21 + $0x13a] sm:$0xff]  ;;  %4298 = vst [vmem:[#allocation32_spill] sm:$0xff] %v3572_v14 }
  0xb2   : > { %1065 = vmatprep.mubr.f32.mxu0 %v3546_v63  ;;  %4296 = vst [vmem:[#allocation30_spill] sm:$0xff] %v3566_v43  ;;  %v3569_v22 = vld [vmem:[%s2841_s21 + $0x141] sm:$0xff] }
  0xb3   : > { %4297 = vst [vmem:[#allocation31_spill] sm:$0xff] %v3569_v22 }
  0xb4   : > { %841 = vmatmul.mubr.f32.gmra.mrb[50].mxu1 %v3520_v57  ;;  %v3585_v57 = vld [vmem:[%s2841_s21 + $0x168] sm:$0xff] }
  0xb5   : > { %1066 = vmatmul.mubr.f32.gmra.mrb[50].mxu0 %v3553_v60  ;;  %845 = vmatprep.mubr.f32.mxu1 %v3556_v36  ;;  %v3579_v60 = vld [vmem:[%s2841_s21 + $0x142] sm:$0xff]  ;;  %v3582_v36 = vld [vmem:[%s2841_s21 + $0x151] sm:$0xff] }
  0xb6   : > { %1070 = vmatprep.mubr.f32.mxu0 %v3559_v38  ;;  %4299 = vst [vmem:[#allocation33_spill] sm:$0xff] %v3579_v60  ;;  %4300 = vst [vmem:[#allocation34_spill] sm:$0xff] %v3582_v36 }
  0xb8   : > { %846 = vmatmul.mubr.f32.gmra.mrb[52].mxu1 %v3533_v23  ;;  %v3598_v23 = vld [vmem:[%s2841_s21 + $0x170] sm:$0xff] }
  0xb9   : > { %1071 = vmatmul.mubr.f32.gmra.mrb[52].mxu0 %v3566_v43  ;;  %850 = vmatprep.mubr.f32.mxu1 %v3569_v22  ;;  %v3592_v43 = vld [vmem:[%s2841_s21 + $0x152] sm:$0xff] }
  0xba   : > { %1075 = vmatprep.mubr.f32.mxu0 %v3572_v14  ;;  %4301 = vst [vmem:[#allocation35_spill] sm:$0xff] %v3592_v43  ;;  %v3595_v22 = vld [vmem:[%s2841_s21 + $0x159] sm:$0xff] }
  0xbb   : > { %4302 = vst [vmem:[#allocation36_spill] sm:$0xff] %v3595_v22 }
  0xbc   : > { %851 = vmatmul.mubr.f32.gmra.mrb[54].mxu1 %v3546_v63  ;;  %v3611_v63 = vld [vmem:[%s2841_s21 + $0x180] sm:$0xff] }
  0xbd   : > { %1076 = vmatmul.mubr.f32.gmra.mrb[54].mxu0 %v3579_v60  ;;  %855 = vmatprep.mubr.f32.mxu1 %v3582_v36  ;;  %v3605_v60 = vld [vmem:[%s2841_s21 + $0x15a] sm:$0xff]  ;;  %v3608_v36 = vld [vmem:[%s2841_s21 + $0x169] sm:$0xff]  ;;  %4304 = vst [vmem:[#allocation38_spill] sm:$0xff] %v3611_v63 }
  0xbe   : > { %1080 = vmatprep.mubr.f32.mxu0 %v3585_v57  ;;  %4303 = vst [vmem:[#allocation37_spill] sm:$0xff] %v3605_v60 }
  0xc0   : > { %856 = vmatmul.mubr.f32.gmra.mrb[56].mxu1 %v3559_v38  ;;  %v3624_v38 = vld [vmem:[%s2841_s21 + $0x188] sm:$0xff] }
  0xc1   : > { %1081 = vmatmul.mubr.f32.gmra.mrb[56].mxu0 %v3592_v43  ;;  %860 = vmatprep.mubr.f32.mxu1 %v3595_v22  ;;  %v3618_v43 = vld [vmem:[%s2841_s21 + $0x16a] sm:$0xff]  ;;  %4306 = vst [vmem:[#allocation40_spill] sm:$0xff] %v3624_v38 }
  0xc2   : > { %1085 = vmatprep.mubr.f32.mxu0 %v3598_v23  ;;  %4305 = vst [vmem:[#allocation39_spill] sm:$0xff] %v3618_v43  ;;  %v3621_v22 = vld [vmem:[%s2841_s21 + $0x171] sm:$0xff] }
  0xc4   : > { %861 = vmatmul.mubr.f32.gmra.mrb[58].mxu1 %v3572_v14  ;;  %v3631_v14 = vld [vmem:[%s2841_s21 + $0x172] sm:$0xff] }
  0xc5   : > { %1086 = vmatmul.mubr.f32.gmra.mrb[58].mxu0 %v3605_v60  ;;  %865 = vmatprep.mubr.f32.mxu1 %v3608_v36  ;;  %4307 = vst [vmem:[#allocation41_spill] sm:$0xff] %v3631_v14  ;;  %v630_v60 = vld [vmem:[%s4206_s1 + $0x410] sm:$0xff] }
  0xc6   : > { %1090 = vmatprep.mubr.f32.mxu0 %v3611_v63  ;;  %v633_v63 = vld [vmem:[%s4206_s1 + $0x428] sm:$0xff] }
  0xc8   : > { %866 = vmatmul.mubr.f32.gmra.mrb[60].mxu1 %v3585_v57 }
  0xc9   : > { %1091 = vmatmul.mubr.f32.gmra.mrb[60].mxu0 %v3618_v43  ;;  %870 = vmatprep.mubr.f32.mxu1 %v3621_v22  ;;  %v631_v43 = vld [vmem:[%s4206_s1 + $0x418] sm:$0xff] }
  0xca   : > { %1095 = vmatprep.mubr.f32.mxu0 %v3624_v38  ;;  %v2432_v38 = vpack.c.bf16 %v631_v43, %v630_v60  ;;  %v4342_v60 = vld [vmem:[#allocation27_spill] sm:$0xff] }
  0xcc   : > { %871 = vmatmul.mubr.f32.gmra.mrb[62].mxu1 %v3598_v23 }
  0xcd   : > { %1096 = vmatmul.mubr.f32.gmra.mrb[62].mxu0 %v3631_v14  ;;  %1430 = vmatprep.mubr.f32.mxu1 %v3291_v31  ;;  %v632_v14 = vld [vmem:[%s4206_s1 + $0x420] sm:$0xff] }
  0xce   : > { %1165 = vmatprep.mubr.f32.mxu0 %v3047_v61  ;;  %v4308_v61 = vmov 0.0|0.0  }
  0xd0   : > { %1431 = vmatmul.mubr.f32.vlgmr.msra.gmra.mrb[64].mxu1 %v3236_v42  ;;  %v634_v42 = vld [vmem:[%s4206_s1 + $0x430] sm:$0xff] }
  0xd1   : > { %1166 = vmatmul.mubr.f32.vlgmr.msra.gmra.mrb[0].mxu0 %v3026_v53  ;;  %2431 = vmatpush3.bf16.msra.mxu1 %v3427_v13  ;;  %v2436_v53 = vpack.c.bf16 %v633_v63, %v632_v14  ;;  %v4329_v63 = vld [vmem:[#allocation13_spill] sm:$0xff]  ;;  %v3788_v13 = vld [vmem:[%s2841_s21 + $0x181] sm:$0xff] }
  0xd2   : > { %2382 = vmatpush1.bf16.msra.mxu0 %v3003_v41  ;;  %1170 = vmatprep.mubr.f32.mxu0 %v3074_v7  ;;  %v635_v41 = vld [vmem:[%s4206_s1 + $0x438] sm:$0xff]  ;;  %v636_v7 = vld [vmem:[%s4206_s1 + $0x440] sm:$0xff]  ;;  %v4337_v14 = vld [vmem:[#allocation19_spill] sm:$0xff] }
  0xd3   : > { %1435 = vmatprep.mubr.f32.mxu1 %v3320_v47  ;;  %2383 = vmatprep.subr.bf16.mxu0 %v4308_v61 }
  0xd4   : > { %1436 = vmatmul.mubr.f32.gmra.mrb[66].mxu1 %v3265_v21  ;;  %2433 = vmatprep.subr.bf16.mxu1 %v2432_v38  ;;  %v4322_v21 = vld [vmem:[#allocation6_spill] sm:$0xff] }
  0xd5   : > { %1171 = vmatmul.mubr.f32.gmra.mrb[2].mxu0 %v3050_v62  ;;  %1440 = vmatprep.mubr.f32.mxu1 %v3350_v0  ;;  %v2440_v62 = vpack.c.bf16 %v635_v41, %v634_v42  ;;  %v2073_v42 = vld [vmem:[%s2841_s21 + $0x3a] sm:$0xff] }
  0xd6   : > { %1175 = vmatprep.mubr.f32.mxu0 %v3100_v15  ;;  %2385 = vmatpush1.bf16.msra.mxu0 %v3030_v56  ;;  %v637_v15 = vld [vmem:[%s4206_s1 + $0x448] sm:$0xff]  ;;  %v4343_v41 = vld [vmem:[#allocation30_spill] sm:$0xff] }
  0xd7   : > { %2435 = vmatpush3.bf16.msra.mxu1 %v2432_v38  ;;  %2386 = vmatprep.subr.bf16.mxu0 %v4308_v61  ;;  %v2444_v56 = vpack.c.bf16 %v637_v15, %v636_v7 }
  0xd8   : > { %1441 = vmatmul.mubr.f32.gmra.mrb[68].mxu1 %v3294_v35  ;;  %2437 = vmatprep.subr.bf16.mxu1 %v2436_v53  ;;  %v4325_v35 = vld [vmem:[#allocation12_spill] sm:$0xff] }
  0xd9   : > { %1176 = vmatmul.mubr.f32.gmra.mrb[4].mxu0 %v3077_v8  ;;  %1445 = vmatprep.mubr.f32.mxu1 %v3380_v26  ;;  %v638_v8 = vld [vmem:[%s4206_s1 + $0x450] sm:$0xff] }
  0xda   : > { %1180 = vmatprep.mubr.f32.mxu0 %v3126_v24  ;;  %2388 = vmatpush1.bf16.msra.mxu0 %v3055_v1  ;;  %v639_v24 = vld [vmem:[%s4206_s1 + $0x458] sm:$0xff] }
  0xdb   : > { %2389 = vmatprep.subr.bf16.mxu0 %v4308_v61  ;;  %2439 = vmatpush3.bf16.msra.mxu1 %v2436_v53  ;;  %v2448_v1 = vpack.c.bf16 %v639_v24, %v638_v8  ;;  %v4344_v8 = vld [vmem:[#allocation33_spill] sm:$0xff]  ;;  %v2076_v24 = vld [vmem:[%s2841_s21 + $0x62] sm:$0xff] }
  0xdc   : > { %1446 = vmatmul.mubr.f32.gmra.mrb[70].mxu1 %v3323_v50  ;;  %2441 = vmatprep.subr.bf16.mxu1 %v2440_v62  ;;  %v4328_v50 = vld [vmem:[#allocation34_spill] sm:$0xff] }
  0xdd   : > { %1181 = vmatmul.mubr.f32.gmra.mrb[6].mxu0 %v3103_v16  ;;  %1450 = vmatprep.mubr.f32.mxu1 %v3416_v58  ;;  %v640_v16 = vld [vmem:[%s4206_s1 + $0x460] sm:$0xff] }
  0xde   : > { %1185 = vmatprep.mubr.f32.mxu0 %v3152_v33  ;;  %2391 = vmatpush1.bf16.msra.mxu0 %v3082_v10  ;;  %v641_v33 = vld [vmem:[%s4206_s1 + $0x468] sm:$0xff] }
  0xdf   : > { %2392 = vmatprep.subr.bf16.mxu0 %v4308_v61  ;;  %2443 = vmatpush3.bf16.msra.mxu1 %v2440_v62  ;;  %v2452_v10 = vpack.c.bf16 %v641_v33, %v640_v16  ;;  %v2074_v62 = vld [vmem:[%s2841_s21 + $0x4a] sm:$0xff] }
  0xe0   : > { %1451 = vmatmul.mubr.f32.gmra.mrb[72].mxu1 %v3353_v6  ;;  %2445 = vmatprep.subr.bf16.mxu1 %v2444_v56  ;;  %v4331_v6 = vld [vmem:[#allocation29_spill] sm:$0xff]  ;;  %v2077_v33 = vld [vmem:[%s2841_s21 + $0x6a] sm:$0xff] }
  0xe1   : > { %1186 = vmatmul.mubr.f32.gmra.mrb[8].mxu0 %v3129_v25  ;;  %1455 = vmatprep.mubr.f32.mxu1 %v3436_v20  ;;  %v642_v25 = vld [vmem:[%s4206_s1 + $0x470] sm:$0xff] }
  0xe2   : > { %1190 = vmatprep.mubr.f32.mxu0 %v3178_v44  ;;  %2394 = vmatpush1.bf16.msra.mxu0 %v3108_v19  ;;  %v643_v44 = vld [vmem:[%s4206_s1 + $0x478] sm:$0xff] }
  0xe3   : > { %2395 = vmatprep.subr.bf16.mxu0 %v4308_v61  ;;  %2447 = vmatpush3.bf16.msra.mxu1 %v2444_v56  ;;  %v2456_v19 = vpack.c.bf16 %v643_v44, %v642_v25  ;;  %v2075_v56 = vld [vmem:[%s2841_s21 + $0x52] sm:$0xff]  ;;  %v2078_v25 = vld [vmem:[%s2841_s21 + $0x7a] sm:$0xff] }
  0xe4   : > { %1456 = vmatmul.mubr.f32.gmra.mrb[74].mxu1 %v3383_v29  ;;  %2449 = vmatprep.subr.bf16.mxu1 %v2448_v1  ;;  %v4333_v29 = vld [vmem:[#allocation14_spill] sm:$0xff] }
  0xe5   : > { %1191 = vmatmul.mubr.f32.gmra.mrb[10].mxu0 %v3155_v34  ;;  %1460 = vmatprep.mubr.f32.mxu1 %v3452_v39  ;;  %v4310_v34 = vld [vmem:[#allocation2_spill] sm:$0xff] }
  0xe6   : > { %1195 = vmatprep.mubr.f32.mxu0 %v3204_v54  ;;  %2397 = vmatpush1.bf16.msra.mxu0 %v3134_v28  ;;  %v4309_v28 = vld [vmem:[#allocation5_spill] sm:$0xff]  ;;  %v4314_v54 = vld [vmem:[#allocation3_spill] sm:$0xff] }
  0xe7   : > { %2398 = vmatprep.subr.bf16.mxu0 %v4308_v61  ;;  %2451 = vmatpush3.bf16.msra.mxu1 %v2448_v1 }
  0xe8   : > { %1461 = vmatmul.mubr.f32.gmra.mrb[76].mxu1 %v3419_v2  ;;  %2453 = vmatprep.subr.bf16.mxu1 %v2452_v10  ;;  %v4335_v2 = vld [vmem:[#allocation15_spill] sm:$0xff] }
  0xe9   : > { %1196 = vmatmul.mubr.f32.gmra.mrb[12].mxu0 %v3181_v45  ;;  %1465 = vmatprep.mubr.f32.mxu1 %v3465_v49  ;;  %v4312_v45 = vld [vmem:[#allocation22_spill] sm:$0xff] }
  0xea   : > { %1200 = vmatprep.mubr.f32.mxu0 %v3230_v4  ;;  %2400 = vmatpush1.bf16.msra.mxu0 %v3160_v37  ;;  %v4311_v37 = vld [vmem:[#allocation16_spill] sm:$0xff]  ;;  %v4317_v4 = vld [vmem:[#allocation9_spill] sm:$0xff] }
  0xeb   : > { %2401 = vmatprep.subr.bf16.mxu0 %v4308_v61  ;;  %2455 = vmatpush3.bf16.msra.mxu1 %v2452_v10  ;;  %v4345_v10 = vld [vmem:[#allocation35_spill] sm:$0xff] }
  0xec   : > { %1466 = vmatmul.mubr.f32.gmra.mrb[78].mxu1 %v3439_v27  ;;  %2457 = vmatprep.subr.bf16.mxu1 %v2456_v19  ;;  %v2070_v27 = vld [vmem:[%s2841_s21 + $0x199] sm:$0xff] }
  0xed   : > { %1201 = vmatmul.mubr.f32.gmra.mrb[14].mxu0 %v3207_v55  ;;  %1470 = vmatprep.mubr.f32.mxu1 %v3478_v3  ;;  %v4315_v55 = vld [vmem:[#allocation18_spill] sm:$0xff] }
  0xee   : > { %1205 = vmatprep.mubr.f32.mxu0 %v3259_v17  ;;  %2403 = vmatpush1.bf16.msra.mxu0 %v3186_v48  ;;  %v4313_v48 = vld [vmem:[#allocation7_spill] sm:$0xff]  ;;  %v4320_v17 = vld [vmem:[#allocation28_spill] sm:$0xff] }
  0xef   : > { %2404 = vmatprep.subr.bf16.mxu0 %v4308_v61  ;;  %2459 = vmatpush3.bf16.msra.mxu1 %v2456_v19 }
  0xf0   : > { %1471 = vmatmul.mubr.f32.gmra.mrb[80].mxu1 %v3455_v40  ;;  %v4341_v40 = vld [vmem:[#allocation24_spill] sm:$0xff] }
  0xf1   : > { %1206 = vmatmul.mubr.f32.gmra.mrb[16].mxu0 %v3233_v5  ;;  %1475 = vmatprep.mubr.f32.mxu1 %v3491_v32  ;;  %v4318_v5 = vld [vmem:[#allocation4_spill] sm:$0xff] }
  0xf2   : > { %1210 = vmatprep.mubr.f32.mxu0 %v3288_v30  ;;  %2406 = vmatpush1.bf16.msra.mxu0 %v3212_v59  ;;  %v4316_v59 = vld [vmem:[#allocation25_spill] sm:$0xff]  ;;  %v4323_v30 = vld [vmem:[#allocation23_spill] sm:$0xff] }
  0xf3   : > { %2407 = vmatprep.subr.bf16.mxu0 %v4308_v61 }
  0xf4   : > { %1476 = vmatmul.mubr.f32.gmra.mrb[82].mxu1 %v3468_v52  ;;  %v2039_v52 = vld [vmem:[%s2841_s21 + $0x1a0] sm:$0xff] }
  0xf5   : > { %1211 = vmatmul.mubr.f32.gmra.mrb[18].mxu0 %v3262_v18  ;;  %1480 = vmatprep.mubr.f32.mxu1 %v3504_v11  ;;  %v4321_v18 = vld [vmem:[#allocation11_spill] sm:$0xff] }
  0xf6   : > { %1215 = vmatprep.mubr.f32.mxu0 %v3317_v46  ;;  %2409 = vmatpush1.bf16.msra.mxu0 %v3240_v9  ;;  %v4319_v9 = vld [vmem:[#allocation20_spill] sm:$0xff] }
  0xf7   : > { %2410 = vmatprep.subr.bf16.mxu0 %v4308_v61  ;;  %v4326_v46 = vld [vmem:[#allocation8_spill] sm:$0xff] }
  0xf8   : > { %1481 = vmatmul.mubr.f32.gmra.mrb[84].mxu1 %v3481_v12  ;;  %v4336_v12 = vld [vmem:[#allocation17_spill] sm:$0xff] }
  0xf9   : > { %1216 = vmatmul.mubr.f32.gmra.mrb[20].mxu0 %v3291_v31  ;;  %1485 = vmatprep.mubr.f32.mxu1 %v3517_v51  ;;  %v4324_v31 = vld [vmem:[#allocation31_spill] sm:$0xff] }
  0xfa   : > { %1220 = vmatprep.mubr.f32.mxu0 %v4309_v28  ;;  %2412 = vmatpush1.bf16.msra.mxu0 %v4310_v34  ;;  %v2079_v28 = vld [vmem:[%s2841_s21 + $0x82] sm:$0xff]  ;;  %v4346_v34 = vld [vmem:[#allocation37_spill] sm:$0xff] }
  0xfb   : > { %2413 = vmatprep.subr.bf16.mxu0 %v4308_v61 }
  0xfc   : > { %1486 = vmatmul.mubr.f32.gmra.mrb[86].mxu1 %v4311_v37  ;;  %v2080_v37 = vld [vmem:[%s2841_s21 + $0x92] sm:$0xff] }
  0xfd   : > { %1221 = vmatmul.mubr.f32.gmra.mrb[22].mxu0 %v3320_v47  ;;  %1490 = vmatprep.mubr.f32.mxu1 %v4312_v45  ;;  %v4327_v47 = vld [vmem:[#allocation26_spill] sm:$0xff] }
  0xfe   : > { %1225 = vmatprep.mubr.f32.mxu0 %v4313_v48  ;;  %2415 = vmatpush1.bf16.msra.mxu0 %v4314_v54  ;;  %v2081_v54 = vld [vmem:[%s2841_s21 + $0x9a] sm:$0xff] }
  0xff   : > { %2416 = vmatprep.subr.bf16.mxu0 %v4308_v61 }
 0x100   : > { %1491 = vmatmul.mubr.f32.gmra.mrb[88].mxu1 %v4315_v55  ;;  %v4347_v55 = vld [vmem:[#allocation39_spill] sm:$0xff] }
 0x101   : > { %1226 = vmatmul.mubr.f32.gmra.mrb[24].mxu0 %v3350_v0  ;;  %1495 = vmatprep.mubr.f32.mxu1 %v4316_v59  ;;  %v4330_v0 = vld [vmem:[#allocation10_spill] sm:$0xff] }
 0x102   : > { %1230 = vmatprep.mubr.f32.mxu0 %v4317_v4  ;;  %2418 = vmatpush1.bf16.msra.mxu0 %v4318_v5 }
 0x103   : > { %2419 = vmatprep.subr.bf16.mxu0 %v4308_v61 }
 0x104   : > { %1496 = vmatmul.mubr.f32.gmra.mrb[90].mxu1 %v4319_v9  ;;  %v2083_v9 = vld [vmem:[%s2841_s21 + $0xb2] sm:$0xff] }
 0x105   : > { %1231 = vmatmul.mubr.f32.gmra.mrb[26].mxu0 %v3380_v26  ;;  %1500 = vmatprep.mubr.f32.mxu1 %v4320_v17  ;;  %v4332_v26 = vld [vmem:[#allocation36_spill] sm:$0xff] }
 0x106   : > { %1235 = vmatprep.mubr.f32.mxu0 %v4321_v18  ;;  %2421 = vmatpush1.bf16.msra.mxu0 %v4322_v21  ;;  %v2084_v18 = vld [vmem:[%s2841_s21 + $0xc2] sm:$0xff] }
 0x107   : > { %2422 = vmatprep.subr.bf16.mxu0 %v4308_v61 }
 0x108   : > { %1501 = vmatmul.mubr.f32.gmra.mrb[92].mxu1 %v4323_v30  ;;  %v3854_v30 = vld [vmem:[%s2841_s21 + $0x182] sm:$0xff] }
 0x109   : > { %1236 = vmatmul.mubr.f32.gmra.mrb[28].mxu0 %v3416_v58  ;;  %1505 = vmatprep.mubr.f32.mxu1 %v4324_v31  ;;  %v4334_v58 = vld [vmem:[#allocation32_spill] sm:$0xff] }
 0x10a   : > { %1240 = vmatprep.mubr.f32.mxu0 %v4325_v35  ;;  %2424 = vmatpush1.bf16.msra.mxu0 %v4326_v46  ;;  %v2085_v35 = vld [vmem:[%s2841_s21 + $0xca] sm:$0xff] }
 0x10b   : > { %2425 = vmatprep.subr.bf16.mxu0 %v4308_v61  ;;  %v2072_v61 = vld [vmem:[%s2841_s21 + $0x32] sm:$0xff] }
 0x10c   : > { %1506 = vmatmul.mubr.f32.gmra.mrb[94].mxu1 %v4327_v47  ;;  %v3863_v47 = vld [vmem:[%s2841_s21 + $0x18a] sm:$0xff] }
 0x10d   : > { %1241 = vmatmul.mubr.f32.gmra.mrb[30].mxu0 %v3436_v20  ;;  %1510 = vmatprep.mubr.f32.mxu1 %v4328_v50  ;;  %v3795_v20 = vld [vmem:[%s2841_s21 + $0x189] sm:$0xff] }
 0x10e   : > { %1245 = vmatprep.mubr.f32.mxu0 %v4329_v63  ;;  %2427 = vmatpush1.bf16.msra.mxu0 %v4330_v0  ;;  %v2087_v63 = vld [vmem:[%s2841_s21 + $0xe2] sm:$0xff] }
 0x110   : > { %1511 = vmatmul.mubr.f32.gmra.mrb[96].mxu1 %v4331_v6  ;;  %v2040_v6 = vld [vmem:[%s2841_s21 + $0x31] sm:$0xff] }
 0x111   : > { %1246 = vmatmul.mubr.f32.gmra.mrb[32].mxu0 %v3452_v39  ;;  %1515 = vmatprep.mubr.f32.mxu1 %v4332_v26  ;;  %v2038_v39 = vld [vmem:[%s2841_s21 + $0x198] sm:$0xff] }
 0x112   : > { %1250 = vmatprep.mubr.f32.mxu0 %v4333_v29  ;;  %v2008_v29 = vld [vmem:[%s2841_s21 + $0x30] sm:$0xff] }
 0x114   : > { %1516 = vmatmul.mubr.f32.gmra.mrb[98].mxu1 %v4334_v58 }
 0x115   : > { %1251 = vmatmul.mubr.f32.gmra.mrb[34].mxu0 %v3465_v49  ;;  %1520 = vmatprep.mubr.f32.mxu1 %v3608_v36 }
 0x116   : > { %1255 = vmatprep.mubr.f32.mxu0 %v4335_v2  ;;  %v2041_v2 = vld [vmem:[%s2841_s21 + $0x39] sm:$0xff] }
 0x118   : > { %1521 = vmatmul.mubr.f32.gmra.mrb[100].mxu1 %v3585_v57  ;;  %v4338_v57 = vld [vmem:[#allocation38_spill] sm:$0xff] }
 0x119   : > { %1256 = vmatmul.mubr.f32.gmra.mrb[36].mxu0 %v3478_v3  ;;  %1525 = vmatprep.mubr.f32.mxu1 %v3621_v22  ;;  %v4339_v3 = vld [vmem:[#allocation21_spill] sm:$0xff] }
 0x11a   : > { %1260 = vmatprep.mubr.f32.mxu0 %v4336_v12 }
 0x11c   : > { %1526 = vmatmul.mubr.f32.gmra.mrb[102].mxu1 %v3598_v23 }
 0x11d   : > { %1261 = vmatmul.mubr.f32.gmra.mrb[38].mxu0 %v3491_v32  ;;  %1530 = vmatprep.mubr.f32.mxu1 %v3788_v13  ;;  %v4340_v32 = vld [vmem:[#allocation40_spill] sm:$0xff] }
 0x11e   : > { %1265 = vmatprep.mubr.f32.mxu0 %v4337_v14 }
 0x120   : > { %1531 = vmatmul.mubr.f32.gmra.mrb[104].mxu1 %v4338_v57  ;;  %v2009_v57 = vld [vmem:[%s2841_s21 + $0x38] sm:$0xff] }
 0x121   : > { %1266 = vmatmul.mubr.f32.gmra.mrb[40].mxu0 %v3504_v11  ;;  %1535 = vmatprep.mubr.f32.mxu1 %v3795_v20  ;;  %v2071_v11 = vld [vmem:[%s2841_s21 + $0x1a1] sm:$0xff] }
 0x122   : > { %1270 = vmatprep.mubr.f32.mxu0 %v4339_v3 }
 0x123   : > { %v3802_v23 = vpop.f32.mrb[0].mxu1 }
 0x124   : > { %1536 = vmatmul.mubr.f32.gmra.mrb[106].mxu1 %v4340_v32  ;;  %v719_v38 = vpop.f32.mrb[1].mxu1 }
 0x125   : > { %1271 = vmatmul.mubr.f32.gmra.mrb[42].mxu0 %v3517_v51  ;;  %1540 = vmatprep.mubr.f32.mxu1 %v2070_v27  ;;  %v2010_v38 = vld [vmem:[%s2841_s21 + $0x48] sm:$0xff] }
 0x126   : > { %1275 = vmatprep.mubr.f32.mxu0 %v4341_v40 }
 0x127   : > { %v3809_v43 = vpop.f32.mrb[2].mxu1 }
 0x128   : > { %1541 = vmatmul.mubr.f32.gmra.mrb[108].mxu1 %v2038_v39  ;;  %v724_v49 = vpop.f32.mrb[3].mxu1  ;;  %v2043_v39 = vld [vmem:[%s2841_s21 + $0x51] sm:$0xff] }
 0x129   : > { %1276 = vmatmul.mubr.f32.gmra.mrb[44].mxu0 %v4312_v45  ;;  %1545 = vmatprep.mubr.f32.mxu1 %v2071_v11  ;;  %v2011_v11 = vld [vmem:[%s2841_s21 + $0x50] sm:$0xff]  ;;  %v2044_v49 = vld [vmem:[%s2841_s21 + $0x61] sm:$0xff] }
 0x12a   : > { %1280 = vmatprep.mubr.f32.mxu0 %v4342_v60 }
 0x12b   : > { %v3815_v51 = vpop.f32.mrb[4].mxu1 }
 0x12c   : > { %1546 = vmatmul.mubr.f32.gmra.mrb[110].mxu1 %v2039_v52  ;;  %v729_v53 = vpop.f32.mrb[5].mxu1  ;;  %v2012_v52 = vld [vmem:[%s2841_s21 + $0x60] sm:$0xff] }
 0x12d   : > { %1281 = vmatmul.mubr.f32.gmra.mrb[46].mxu0 %v4316_v59  ;;  %2188 = vmatprep.mubr.f32.mxu1 %v2072_v61  ;;  %v2082_v59 = vld [vmem:[%s2841_s21 + $0xaa] sm:$0xff] }
 0x12e   : > { %1285 = vmatprep.mubr.f32.mxu0 %v4343_v41  ;;  %v2045_v61 = vld [vmem:[%s2841_s21 + $0x69] sm:$0xff] }
 0x12f   : > { %v3821_v7 = vpop.f32.mrb[6].mxu1 }
 0x130   : > { %2189 = vmatmul.mubr.f32.vlgmr.msra.gmra.mrb[112].mxu1 %v2073_v42  ;;  %v734_v15 = vpop.f32.mrb[7].mxu1  ;;  %v2013_v42 = vld [vmem:[%s2841_s21 + $0x68] sm:$0xff] }
 0x131   : > { %1286 = vmatmul.mubr.f32.gmra.mrb[48].mxu0 %v4320_v17  ;;  %2191 = vmatprep.mubr.f32.mxu1 %v2074_v62  ;;  %v4348_v17 = vld [vmem:[#allocation41_spill] sm:$0xff] }
 0x132   : > { %1290 = vmatprep.mubr.f32.mxu0 %v4344_v8  ;;  %v2046_v62 = vld [vmem:[%s2841_s21 + $0x79] sm:$0xff] }
 0x133   : > { %v3827_v1 = vpop.f32.mrb[8].mxu1 }
 0x134   : > { %2192 = vmatmul.mubr.f32.gmra.mrb[114].mxu1 %v2075_v56  ;;  %v739_v16 = vpop.f32.mrb[9].mxu1  ;;  %v2014_v56 = vld [vmem:[%s2841_s21 + $0x78] sm:$0xff] }
 0x135   : > { %1291 = vmatmul.mubr.f32.gmra.mrb[50].mxu0 %v4324_v31  ;;  %2194 = vmatprep.mubr.f32.mxu1 %v2076_v24  ;;  %v2047_v16 = vld [vmem:[%s2841_s21 + $0x81] sm:$0xff] }
 0x136   : > { %1295 = vmatprep.mubr.f32.mxu0 %v4345_v10 }
 0x137   : > { %v3833_v44 = vpop.f32.mrb[10].mxu1 }
 0x138   : > { %2195 = vmatmul.mubr.f32.gmra.mrb[116].mxu1 %v2077_v33  ;;  %v744_v19 = vpop.f32.mrb[11].mxu1 }
 0x139   : > { %1296 = vmatmul.mubr.f32.gmra.mrb[52].mxu0 %v4328_v50  ;;  %2197 = vmatprep.mubr.f32.mxu1 %v2078_v25  ;;  %v2015_v25 = vld [vmem:[%s2841_s21 + $0x80] sm:$0xff] }
 0x13a   : > { %1300 = vmatprep.mubr.f32.mxu0 %v4346_v34 }
 0x13b   : > { %v3839_v45 = vpop.f32.mrb[12].mxu1 }
 0x13c   : > { %2198 = vmatmul.mubr.f32.gmra.mrb[118].mxu1 %v2079_v28  ;;  %v749_v48 = vpop.f32.mrb[13].mxu1 }
 0x13d   : > { %1301 = vmatmul.mubr.f32.gmra.mrb[54].mxu0 %v4332_v26  ;;  %2200 = vmatprep.mubr.f32.mxu1 %v2080_v37 }
 0x13e   : > { %1305 = vmatprep.mubr.f32.mxu0 %v4347_v55 }
 0x13f   : > { %v3845_v4 = vpop.f32.mrb[14].mxu1 }
 0x140   : > { %2201 = vmatmul.mubr.f32.gmra.mrb[120].mxu1 %v2081_v54  ;;  %v754_v5 = vpop.f32.mrb[15].mxu1 }
 0x141   : > { %1306 = vmatmul.mubr.f32.gmra.mrb[56].mxu0 %v3608_v36  ;;  %2203 = vmatprep.mubr.f32.mxu1 %v2082_v59  ;;  %v2086_v36 = vld [vmem:[%s2841_s21 + $0xda] sm:$0xff] }
 0x142   : > { %1310 = vmatprep.mubr.f32.mxu0 %v4348_v17 }
 0x143   : > { %v3851_v21 = vpop.f32.mrb[16].mxu1 }
 0x144   : > { %2204 = vmatmul.mubr.f32.gmra.mrb[122].mxu1 %v2083_v9  ;;  %v759_v31 = vpop.f32.mrb[17].mxu1 }
 0x145   : > { %1311 = vmatmul.mubr.f32.gmra.mrb[58].mxu0 %v3621_v22  ;;  %2206 = vmatprep.mubr.f32.mxu1 %v2084_v18  ;;  %v2088_v22 = vld [vmem:[%s2841_s21 + $0xf2] sm:$0xff] }
 0x146   : > { %1315 = vmatprep.mubr.f32.mxu0 %v3854_v30 }
 0x147   : > { %v3860_v46 = vpop.f32.mrb[18].mxu1 }
 0x148   : > { %2207 = vmatmul.mubr.f32.gmra.mrb[124].mxu1 %v2085_v35  ;;  %v764_v50 = vpop.f32.mrb[19].mxu1 }
 0x149   : > { %1316 = vmatmul.mubr.f32.gmra.mrb[60].mxu0 %v3788_v13  ;;  %2209 = vmatprep.mubr.f32.mxu1 %v2086_v36 }
 0x14a   : > { %1320 = vmatprep.mubr.f32.mxu0 %v3863_v47 }
 0x14b   : > { %v3869_v0 = vpop.f32.mrb[20].mxu1 }
 0x14c   : > { %2210 = vmatmul.mubr.f32.gmra.mrb[126].mxu1 %v2087_v63  ;;  %v769_v26 = vpop.f32.mrb[21].mxu1 }
 0x14d   : > { %1321 = vmatmul.mubr.f32.gmra.mrb[62].mxu0 %v3795_v20  ;;  %2212 = vmatprep.mubr.f32.mxu1 %v2088_v22  ;;  %v2042_v20 = vld [vmem:[%s2841_s21 + $0x49] sm:$0xff] }
 0x14e   : > { %1390 = vmatprep.mubr.f32.mxu0 %v2040_v6 }
 0x14f   : > { %v3874_v58 = vpop.f32.mrb[22].mxu1 }
 0x150   : > { %2213 = vmatmul.mubr.f32.gmra.mrb[128].mxu1 %v4336_v12  ;;  %v774_v13 = vpop.f32.mrb[23].mxu1 }
 0x151   : > { %1391 = vmatmul.mubr.f32.vlgmr.msra.gmra.mrb[0].mxu0 %v2008_v29  ;;  %2215 = vmatprep.mubr.f32.mxu1 %v4337_v14 }
 0x152   : > { %1395 = vmatprep.mubr.f32.mxu0 %v2041_v2 }
 0x153   : > { %v3880_v27 = vpop.f32.mrb[24].mxu1 }
 0x154   : > { %2216 = vmatmul.mubr.f32.gmra.mrb[130].mxu1 %v4339_v3  ;;  %v779_v32 = vpop.f32.mrb[25].mxu1 }
 0x155   : > { %1396 = vmatmul.mubr.f32.gmra.mrb[2].mxu0 %v2009_v57  ;;  %2218 = vmatprep.mubr.f32.mxu1 %v4341_v40 }
 0x156   : > { %1400 = vmatprep.mubr.f32.mxu0 %v2042_v20 }
 0x157   : > { %v3886_v12 = vpop.f32.mrb[26].mxu1 }
 0x158   : > { %2219 = vmatmul.mubr.f32.gmra.mrb[132].mxu1 %v4342_v60  ;;  %v784_v14 = vpop.f32.mrb[27].mxu1 }
 0x159   : > { %1401 = vmatmul.mubr.f32.gmra.mrb[4].mxu0 %v2010_v38  ;;  %2221 = vmatprep.mubr.f32.mxu1 %v4343_v41 }
 0x15a   : > { %1405 = vmatprep.mubr.f32.mxu0 %v2043_v39 }
 0x15b   : > { %v3892_v3 = vpop.f32.mrb[28].mxu1 }
 0x15c   : > { %2222 = vmatmul.mubr.f32.gmra.mrb[134].mxu1 %v4344_v8  ;;  %v789_v40 = vpop.f32.mrb[29].mxu1  ;;  %v2102_v8 = vld [vmem:[%s2841_s21 + $0x19a] sm:$0xff] }
 0x15d   : > { %1406 = vmatmul.mubr.f32.gmra.mrb[6].mxu0 %v2011_v11  ;;  %2224 = vmatprep.mubr.f32.mxu1 %v4345_v10  ;;  %v2103_v10 = vld [vmem:[%s2841_s21 + $0x1a2] sm:$0xff] }
 0x15e   : > { %1410 = vmatprep.mubr.f32.mxu0 %v2044_v49 }
 0x15f   : > { %v3898_v60 = vpop.f32.mrb[30].mxu1 }
 0x160   : > { %2225 = vmatmul.mubr.f32.gmra.mrb[136].mxu1 %v4346_v34  ;;  %v794_v53 = vpop.f32.mrb[31].mxu1 }
 0x161   : > { %1411 = vmatmul.mubr.f32.gmra.mrb[8].mxu0 %v2012_v52  ;;  %2227 = vmatprep.mubr.f32.mxu1 %v4347_v55 }
 0x162   : > { %1415 = vmatprep.mubr.f32.mxu0 %v2045_v61 }
 0x163   : > { %v3904_v41 = vpop.f32.mrb[32].mxu1 }
 0x164   : > { %2228 = vmatmul.mubr.f32.gmra.mrb[138].mxu1 %v4348_v17  ;;  %v799_v15 = vpop.f32.mrb[33].mxu1 }
 0x165   : > { %1416 = vmatmul.mubr.f32.gmra.mrb[10].mxu0 %v2013_v42  ;;  %2230 = vmatprep.mubr.f32.mxu1 %v3854_v30 }
 0x166   : > { %1420 = vmatprep.mubr.f32.mxu0 %v2046_v62 }
 0x167   : > { %v3911_v24 = vpop.f32.mrb[34].mxu1 }
 0x168   : > { %2231 = vmatmul.mubr.f32.gmra.mrb[140].mxu1 %v3863_v47  ;;  %v804_v33 = vpop.f32.mrb[35].mxu1 }
 0x169   : > { %1421 = vmatmul.mubr.f32.gmra.mrb[12].mxu0 %v2014_v56  ;;  %2233 = vmatprep.mubr.f32.mxu1 %v2102_v8 }
 0x16a   : > { %1425 = vmatprep.mubr.f32.mxu0 %v2047_v16 }
 0x16b   : > { %v3917_v19 = vpop.f32.mrb[36].mxu1 }
 0x16c   : > { %2234 = vmatmul.mubr.f32.gmra.mrb[142].mxu1 %v2103_v10  ;;  %v809_v28 = vpop.f32.mrb[37].mxu1  ;;  %v3948_v10 = vld [vmem:[%s4207_s2] ss:$0 sm:$0xff] }
 0x16d   : > { %1426 = vmatmul.mubr.f32.gmra.mrb[14].mxu0 %v2015_v25  ;;  %v758_v25 = vadd.f32 %v3948_v10, %v3851_v21  ;;  %v768_v21 = vadd.f32 %v3948_v10, %v3869_v0  ;;  %v778_v0 = vadd.f32 %v3948_v10, %v3880_v27  ;;  %v788_v27 = vadd.f32 %v3948_v10, %v3892_v3 }
 0x16e   : > { %v798_v3 = vadd.f32 %v3948_v10, %v3904_v41 }
 0x16f   : > { %v3919_v34 = vpop.f32.mrb[38].mxu1 }
 0x170   : > { %v814_v37 = vpop.f32.mrb[39].mxu1 }
 0x173   : > { %v3921_v48 = vpop.f32.mrb[40].mxu1 }
 0x174   : > { %v819_v54 = vpop.f32.mrb[41].mxu1 }
 0x177   : > { %v3923_v55 = vpop.f32.mrb[42].mxu1 }
 0x178   : > { %v824_v59 = vpop.f32.mrb[43].mxu1 }
 0x17b   : > { %v3925_v5 = vpop.f32.mrb[44].mxu1 }
 0x17c   : > { %v829_v9 = vpop.f32.mrb[45].mxu1 }
 0x17f   : > { %v3927_v17 = vpop.f32.mrb[46].mxu1 }
 0x180   : > { %v834_v18 = vpop.f32.mrb[47].mxu1 }
 0x181   : > { %v763_v18 = vadd.f32 %v3948_v10, %v3860_v46  ;;  %v773_v46 = vadd.f32 %v3948_v10, %v3874_v58  ;;  %v783_v58 = vadd.f32 %v3948_v10, %v3886_v12  ;;  %v793_v12 = vadd.f32 %v3948_v10, %v3898_v60 }
 0x182   : > { %v803_v60 = vadd.f32 %v3948_v10, %v3911_v24 }
 0x183   : > { %v3929_v30 = vpop.f32.mrb[48].mxu1 }
 0x184   : > { %v839_v31 = vpop.f32.mrb[49].mxu1 }
 0x187   : > { %v3931_v35 = vpop.f32.mrb[50].mxu1 }
 0x188   : > { %v844_v36 = vpop.f32.mrb[51].mxu1 }
 0x18b   : > { %v3933_v47 = vpop.f32.mrb[52].mxu1 }
 0x18c   : > { %v849_v50 = vpop.f32.mrb[53].mxu1 }
 0x18f   : > { %v3935_v63 = vpop.f32.mrb[54].mxu1 }
 0x190   : > { %v854_v22 = vpop.f32.mrb[55].mxu1 }
 0x193   : > { %v3937_v6 = vpop.f32.mrb[56].mxu1 }
 0x194   : > { %v859_v26 = vpop.f32.mrb[57].mxu1 }
 0x197   : > { %v3939_v29 = vpop.f32.mrb[58].mxu1 }
 0x198   : > { %v864_v2 = vpop.f32.mrb[59].mxu1 }
 0x19b   : > { %v3941_v13 = vpop.f32.mrb[60].mxu1 }
 0x19c   : > { %v869_v57 = vpop.f32.mrb[61].mxu1 }
 0x19f   : > { %v3943_v20 = vpop.f32.mrb[62].mxu1 }
 0x1a0   : > { %v874_v32 = vpop.f32.mrb[63].mxu1 }
 0x1a3   : > { %v1432_v38 = vpop.f32.mrb[64].mxu1 }
 0x1a4   : > { %v1434_v39 = vpop.f32.mrb[65].mxu1 }
 0x1a7   : > { %v1437_v14 = vpop.f32.mrb[66].mxu1 }
 0x1a8   : > { %v1439_v11 = vpop.f32.mrb[67].mxu1 }
 0x1ab   : > { %v1442_v49 = vpop.f32.mrb[68].mxu1 }
 0x1ac   : > { %v1444_v40 = vpop.f32.mrb[69].mxu1 }
 0x1af   : > { %v1447_v52 = vpop.f32.mrb[70].mxu1 }
 0x1b0   : > { %v1449_v61 = vpop.f32.mrb[71].mxu1 }
 0x1b3   : > { %v1452_v53 = vpop.f32.mrb[72].mxu1 }
 0x1b4   : > { %v1454_v42 = vpop.f32.mrb[73].mxu1 }
 0x1b7   : > { %v1457_v62 = vpop.f32.mrb[74].mxu1 }
 0x1b8   : > { %v1459_v15 = vpop.f32.mrb[75].mxu1 }
 0x1bb   : > { %v1462_v56 = vpop.f32.mrb[76].mxu1 }
 0x1bc   : > { %v1464_v8 = vpop.f32.mrb[77].mxu1 }
 0x1bf   : > { %v1467_v16 = vpop.f32.mrb[78].mxu1 }
 0x1c0   : > { %v1469_v33 = vpop.f32.mrb[79].mxu1 }
 0x1c3   : > { %v3952_v28 = vpop.f32.mrb[80].mxu1 }
 0x1c4   : > { %v1207_v37 = vpop.f32.mrb[16].mxu0  ;;  %v1474_v54 = vpop.f32.mrb[81].mxu1 }
 0x1c5   : > { %v2509_v59 = vadd.f32 %v1207_v37, %v758_v25  ;;  %v1209_v9 = vpop.f32.mrb[17].mxu0 }
 0x1c7   : > { %v3956_v31 = vpop.f32.mrb[82].mxu1  ;;  %v3958_v36 = vadd.f32 %v2509_v59, %v1432_v38 }
 0x1c8   : > { %v1212_v50 = vpop.f32.mrb[18].mxu0  ;;  %v1479_v22 = vpop.f32.mrb[83].mxu1 }
 0x1c9   : > { %v2512_v26 = vadd.f32 %v1212_v50, %v763_v18  ;;  %v1214_v2 = vpop.f32.mrb[19].mxu0 }
 0x1cb   : > { %v3962_v57 = vpop.f32.mrb[84].mxu1  ;;  %v3964_v32 = vadd.f32 %v2512_v26, %v1437_v14 }
 0x1cc   : > { %v1217_v39 = vpop.f32.mrb[20].mxu0  ;;  %v1484_v11 = vpop.f32.mrb[85].mxu1 }
 0x1cd   : > { %v2515_v40 = vadd.f32 %v1217_v39, %v768_v21  ;;  %v1219_v61 = vpop.f32.mrb[21].mxu0 }
 0x1cf   : > { %v3968_v38 = vpop.f32.mrb[86].mxu1  ;;  %v3970_v42 = vadd.f32 %v2515_v40, %v1442_v49 }
 0x1d0   : > { %v1222_v15 = vpop.f32.mrb[22].mxu0  ;;  %v1489_v8 = vpop.f32.mrb[87].mxu1 }
 0x1d1   : > { %v2518_v33 = vadd.f32 %v1222_v15, %v773_v46  ;;  %v1224_v25 = vpop.f32.mrb[23].mxu0 }
 0x1d3   : > { %v3974_v14 = vpop.f32.mrb[88].mxu1  ;;  %v3976_v37 = vadd.f32 %v2518_v33, %v1447_v52 }
 0x1d4   : > { %v1227_v54 = vpop.f32.mrb[24].mxu0  ;;  %v1494_v59 = vpop.f32.mrb[89].mxu1 }
 0x1d5   : > { %v2521_v9 = vadd.f32 %v1227_v54, %v778_v0  ;;  %v1229_v18 = vpop.f32.mrb[25].mxu0 }
 0x1d7   : > { %v3980_v49 = vpop.f32.mrb[90].mxu1  ;;  %v3982_v50 = vadd.f32 %v2521_v9, %v1452_v53 }
 0x1d8   : > { %v1232_v22 = vpop.f32.mrb[26].mxu0  ;;  %v1499_v26 = vpop.f32.mrb[91].mxu1 }
 0x1d9   : > { %v2524_v2 = vadd.f32 %v1232_v22, %v783_v58  ;;  %v1234_v21 = vpop.f32.mrb[27].mxu0 }
 0x1db   : > { %v3986_v52 = vpop.f32.mrb[92].mxu1  ;;  %v3988_v39 = vadd.f32 %v2524_v2, %v1457_v62 }
 0x1dc   : > { %v1237_v11 = vpop.f32.mrb[28].mxu0  ;;  %v1504_v40 = vpop.f32.mrb[93].mxu1 }
 0x1dd   : > { %v2527_v61 = vadd.f32 %v1237_v11, %v788_v27  ;;  %v1239_v46 = vpop.f32.mrb[29].mxu0 }
 0x1df   : > { %v3992_v53 = vpop.f32.mrb[94].mxu1  ;;  %v3994_v15 = vadd.f32 %v2527_v61, %v1462_v56 }
 0x1e0   : > { %v1242_v8 = vpop.f32.mrb[30].mxu0  ;;  %v1509_v33 = vpop.f32.mrb[95].mxu1 }
 0x1e1   : > { %v2530_v25 = vadd.f32 %v1242_v8, %v793_v12  ;;  %v1244_v0 = vpop.f32.mrb[31].mxu0 }
 0x1e3   : > { %v3998_v62 = vpop.f32.mrb[96].mxu1  ;;  %v4000_v54 = vadd.f32 %v2530_v25, %v1467_v16  ;;  %v808_v16 = vadd.f32 %v3948_v10, %v3917_v19 }
 0x1e4   : > { %v1247_v59 = vpop.f32.mrb[32].mxu0  ;;  %v1514_v9 = vpop.f32.mrb[97].mxu1 }
 0x1e5   : > { %v2533_v18 = vadd.f32 %v1247_v59, %v798_v3  ;;  %v1249_v58 = vpop.f32.mrb[33].mxu0 }
 0x1e7   : > { %v4004_v56 = vpop.f32.mrb[98].mxu1  ;;  %v4007_v22 = vadd.f32 %v2533_v18, %v3952_v28  ;;  %v813_v28 = vadd.f32 %v3948_v10, %v3919_v34 }
 0x1e8   : > { %v1252_v26 = vpop.f32.mrb[34].mxu0  ;;  %v1519_v2 = vpop.f32.mrb[99].mxu1 }
 0x1e9   : > { %v2536_v21 = vadd.f32 %v1252_v26, %v803_v60  ;;  %v1254_v41 = vpop.f32.mrb[35].mxu0 }
 0x1eb   : > { %v4011_v27 = vpop.f32.mrb[100].mxu1  ;;  %v4014_v11 = vadd.f32 %v2536_v21, %v3956_v31  ;;  %v818_v31 = vadd.f32 %v3948_v10, %v3921_v48 }
 0x1ec   : > { %v1257_v40 = vpop.f32.mrb[36].mxu0  ;;  %v1524_v61 = vpop.f32.mrb[101].mxu1 }
 0x1ed   : > { %v2539_v24 = vadd.f32 %v1257_v40, %v808_v16  ;;  %v1259_v46 = vpop.f32.mrb[37].mxu0 }
 0x1ef   : > { %v4018_v12 = vpop.f32.mrb[102].mxu1  ;;  %v4021_v8 = vadd.f32 %v2539_v24, %v3962_v57  ;;  %v823_v57 = vadd.f32 %v3948_v10, %v3923_v55 }
 0x1f0   : > { %v1262_v33 = vpop.f32.mrb[38].mxu0  ;;  %v1529_v25 = vpop.f32.mrb[103].mxu1 }
 0x1f1   : > { %v2542_v19 = vadd.f32 %v1262_v33, %v813_v28  ;;  %v1264_v0 = vpop.f32.mrb[39].mxu0 }
 0x1f3   : > { %v4025_v3 = vpop.f32.mrb[104].mxu1  ;;  %v4028_v59 = vadd.f32 %v2542_v19, %v3968_v38  ;;  %v828_v38 = vadd.f32 %v3948_v10, %v3925_v5 }
 0x1f4   : > { %v1267_v9 = vpop.f32.mrb[40].mxu0  ;;  %v1534_v18 = vpop.f32.mrb[105].mxu1 }
 0x1f5   : > { %v2545_v34 = vadd.f32 %v1267_v9, %v818_v31  ;;  %v1269_v58 = vpop.f32.mrb[41].mxu0 }
 0x1f7   : > { %v4032_v60 = vpop.f32.mrb[106].mxu1  ;;  %v4035_v26 = vadd.f32 %v2545_v34, %v3974_v14  ;;  %v833_v14 = vadd.f32 %v3948_v10, %v3927_v17 }
 0x1f8   : > { %v1272_v2 = vpop.f32.mrb[42].mxu0  ;;  %v1539_v21 = vpop.f32.mrb[107].mxu1 }
 0x1f9   : > { %v2548_v48 = vadd.f32 %v1272_v2, %v823_v57  ;;  %v1274_v41 = vpop.f32.mrb[43].mxu0 }
 0x1fa   : > { %v848_v41 = vadd.f32 %v3948_v10, %v3933_v47 }
 0x1fb   : > { %v4039_v16 = vpop.f32.mrb[108].mxu1  ;;  %v4042_v40 = vadd.f32 %v2548_v48, %v3980_v49  ;;  %v838_v49 = vadd.f32 %v3948_v10, %v3929_v30 }
 0x1fc   : > { %v1277_v61 = vpop.f32.mrb[44].mxu0  ;;  %v1544_v24 = vpop.f32.mrb[109].mxu1 }
 0x1fd   : > { %v2551_v55 = vadd.f32 %v1277_v61, %v828_v38  ;;  %v1279_v46 = vpop.f32.mrb[45].mxu0 }
 0x1fe   : > { %v853_v46 = vadd.f32 %v3948_v10, %v3935_v63 }
 0x1ff   : > { %v4046_v28 = vpop.f32.mrb[110].mxu1  ;;  %v4049_v33 = vadd.f32 %v2551_v55, %v3986_v52  ;;  %v843_v52 = vadd.f32 %v3948_v10, %v3931_v35 }
 0x200   : > { %v1282_v25 = vpop.f32.mrb[46].mxu0  ;;  %v1549_v19 = vpop.f32.mrb[111].mxu1 }
 0x201   : > { %v2554_v5 = vadd.f32 %v1282_v25, %v833_v14  ;;  %v1284_v0 = vpop.f32.mrb[47].mxu0 }
 0x202   : > { %v858_v0 = vadd.f32 %v3948_v10, %v3937_v6 }
 0x203   : > { %v4053_v31 = vpop.f32.mrb[112].mxu1  ;;  %v4056_v9 = vadd.f32 %v2554_v5, %v3992_v53 }
 0x204   : > { %v1287_v18 = vpop.f32.mrb[48].mxu0  ;;  %v4058_v34 = vpop.f32.mrb[113].mxu1 }
 0x205   : > { %v2557_v17 = vadd.f32 %v1287_v18, %v838_v49  ;;  %v1289_v58 = vpop.f32.mrb[49].mxu0 }
 0x207   : > { %v4062_v57 = vpop.f32.mrb[114].mxu1  ;;  %v4065_v2 = vadd.f32 %v2557_v17, %v3998_v62 }
 0x208   : > { %v1292_v21 = vpop.f32.mrb[50].mxu0  ;;  %v4067_v30 = vpop.f32.mrb[115].mxu1 }
 0x209   : > { %v2560_v48 = vadd.f32 %v1292_v21, %v843_v52  ;;  %v1294_v53 = vpop.f32.mrb[51].mxu0  ;;  %v863_v21 = vadd.f32 %v3948_v10, %v3939_v29 }
 0x20b   : > { %v4071_v38 = vpop.f32.mrb[116].mxu1  ;;  %v4074_v61 = vadd.f32 %v2560_v48, %v4004_v56 }
 0x20c   : > { %v1297_v35 = vpop.f32.mrb[52].mxu0  ;;  %v4076_v24 = vpop.f32.mrb[117].mxu1 }
 0x20d   : > { %v2563_v55 = vadd.f32 %v1297_v35, %v848_v41  ;;  %v1299_v62 = vpop.f32.mrb[53].mxu0 }
 0x20f   : > { %v4080_v14 = vpop.f32.mrb[118].mxu1  ;;  %v4083_v25 = vadd.f32 %v2563_v55, %v4011_v27 }
 0x210   : > { %v1302_v19 = vpop.f32.mrb[54].mxu0  ;;  %v4085_v47 = vpop.f32.mrb[119].mxu1 }
 0x211   : > { %v2566_v5 = vadd.f32 %v1302_v19, %v853_v46  ;;  %v1304_v56 = vpop.f32.mrb[55].mxu0 }
 0x213   : > { %v2202_v63 = vpop.f32.mrb[120].mxu1  ;;  %v4096_v27 = vadd.f32 %v2566_v5, %v4018_v12 }
 0x214   : > { %v1307_v49 = vpop.f32.mrb[56].mxu0  ;;  %v1663_v18 = vadd.f32 %v3964_v32, %v2202_v63  ;;  %v1657_v17 = vpop.f32.mrb[121].mxu1 }
 0x215   : > { %v2569_v58 = vadd.f32 %v1307_v49, %v858_v0  ;;  %v1309_v52 = vpop.f32.mrb[57].mxu0  ;;  %v1658_v6 = vadd.f32 %v3958_v36, %v1657_v17  ;;  %v868_v36 = vadd.f32 %v3948_v10, %v3941_v13 }
 0x216   : > { %1785 = vst [vmem:[%s4093_s24 + $0x48] sm:$0xff] %v1663_v18 }
 0x217   : > { %1784 = vst [vmem:[%s4093_s24 + $0x40] sm:$0xff] %v1658_v6  ;;  %v2205_v48 = vpop.f32.mrb[122].mxu1  ;;  %v4105_v53 = vadd.f32 %v2569_v58, %v4025_v3 }
 0x218   : > { %v1312_v12 = vpop.f32.mrb[58].mxu0  ;;  %v1673_v41 = vadd.f32 %v3976_v37, %v2205_v48  ;;  %v1667_v32 = vpop.f32.mrb[123].mxu1 }
 0x219   : > { %v2572_v35 = vadd.f32 %v1312_v12, %v863_v21  ;;  %v1314_v55 = vpop.f32.mrb[59].mxu0  ;;  %v1668_v62 = vadd.f32 %v3970_v42, %v1667_v32  ;;  %v873_v42 = vadd.f32 %v3948_v10, %v3943_v20 }
 0x21a   : > { %1787 = vst [vmem:[%s4093_s24 + $0x58] sm:$0xff] %v1673_v41 }
 0x21b   : > { %1786 = vst [vmem:[%s4093_s24 + $0x50] sm:$0xff] %v1668_v62  ;;  %v2208_v29 = vpop.f32.mrb[124].mxu1  ;;  %v4114_v46 = vadd.f32 %v2572_v35, %v4032_v60 }
 0x21c   : > { %v1317_v3 = vpop.f32.mrb[60].mxu0  ;;  %v1683_v19 = vadd.f32 %v3988_v39, %v2208_v29  ;;  %v1677_v37 = vpop.f32.mrb[125].mxu1 }
 0x21d   : > { %v2575_v5 = vadd.f32 %v1317_v3, %v868_v36  ;;  %v1319_v56 = vpop.f32.mrb[61].mxu0  ;;  %v1678_v0 = vadd.f32 %v3982_v50, %v1677_v37  ;;  %v718_v50 = vadd.f32 %v3948_v10, %v3802_v23  ;;  %v723_v23 = vadd.f32 %v3948_v10, %v3809_v43 }
 0x21e   : > { %1789 = vst [vmem:[%s4093_s24 + $0x68] sm:$0xff] %v1683_v19  ;;  %v728_v43 = vadd.f32 %v3948_v10, %v3815_v51  ;;  %v733_v51 = vadd.f32 %v3948_v10, %v3821_v7  ;;  %v738_v7 = vadd.f32 %v3948_v10, %v3827_v1  ;;  %v743_v1 = vadd.f32 %v3948_v10, %v3833_v44 }
 0x21f   : > { %1788 = vst [vmem:[%s4093_s24 + $0x60] sm:$0xff] %v1678_v0  ;;  %v2211_v13 = vpop.f32.mrb[126].mxu1  ;;  %v4123_v63 = vadd.f32 %v2575_v5, %v4039_v16  ;;  %v748_v44 = vadd.f32 %v3948_v10, %v3839_v45  ;;  %v753_v45 = vadd.f32 %v3948_v10, %v3845_v4 }
 0x220   : > { %v1322_v60 = vpop.f32.mrb[62].mxu0  ;;  %v1693_v49 = vadd.f32 %v4000_v54, %v2211_v13  ;;  %v1687_v39 = vpop.f32.mrb[127].mxu1 }
 0x221   : > { %v2578_v18 = vadd.f32 %v1322_v60, %v873_v42  ;;  %v1324_v17 = vpop.f32.mrb[63].mxu0  ;;  %v1688_v58 = vadd.f32 %v3994_v15, %v1687_v39 }
 0x222   : > { %1791 = vst [vmem:[%s4093_s24 + $0x78] sm:$0xff] %v1693_v49 }
 0x223   : > { %1790 = vst [vmem:[%s4093_s24 + $0x70] sm:$0xff] %v1688_v58  ;;  %v2214_v20 = vpop.f32.mrb[128].mxu1  ;;  %v4132_v16 = vadd.f32 %v2578_v18, %v4046_v28 }
 0x224   : > { %v1392_v52 = vpop.f32.mrb[0].mxu0  ;;  %v1703_v54 = vadd.f32 %v4014_v11, %v2214_v20  ;;  %v1697_v6 = vpop.f32.mrb[129].mxu1 }
 0x225   : > { %v2493_v21 = vadd.f32 %v1392_v52, %v718_v50  ;;  %v1394_v48 = vpop.f32.mrb[1].mxu0  ;;  %v1698_v12 = vadd.f32 %v4007_v22, %v1697_v6 }
 0x226   : > { %1793 = vst [vmem:[%s4093_s24 + $0x88] sm:$0xff] %v1703_v54 }
 0x227   : > { %v1618_v15 = vadd.f32 %v2493_v21, %v4058_v34  ;;  %1792 = vst [vmem:[%s4093_s24 + $0x80] sm:$0xff] %v1698_v12  ;;  %v2217_v41 = vpop.f32.mrb[130].mxu1 }
 0x228   : > { %v1397_v28 = vpop.f32.mrb[2].mxu0  ;;  %v1713_v32 = vadd.f32 %v4028_v59, %v2217_v41  ;;  %v1707_v11 = vpop.f32.mrb[131].mxu1 }
 0x229   : > { %1776 = vst [vmem:[%s4093_s24] sm:$0xff] %v1618_v15  ;;  %v2495_v35 = vadd.f32 %v1397_v28, %v723_v23  ;;  %v1399_v55 = vpop.f32.mrb[3].mxu0  ;;  %v1708_v22 = vadd.f32 %v4021_v8, %v1707_v11 }
 0x22a   : > { %1795 = vst [vmem:[%s4093_s24 + $0x98] sm:$0xff] %v1713_v32 }
 0x22b   : > { %v1623_v34 = vadd.f32 %v2495_v35, %v4053_v31  ;;  %1794 = vst [vmem:[%s4093_s24 + $0x90] sm:$0xff] %v1708_v22  ;;  %v2220_v62 = vpop.f32.mrb[132].mxu1 }
 0x22c   : > { %v1402_v36 = vpop.f32.mrb[4].mxu0  ;;  %v1723_v59 = vadd.f32 %v4042_v40, %v2220_v62  ;;  %v1717_v29 = vpop.f32.mrb[133].mxu1 }
 0x22d   : > { %1777 = vst [vmem:[%s4093_s24 + $0x8] sm:$0xff] %v1623_v34  ;;  %v2497_v3 = vadd.f32 %v1402_v36, %v728_v43  ;;  %v1404_v19 = vpop.f32.mrb[5].mxu0  ;;  %v1718_v8 = vadd.f32 %v4035_v26, %v1717_v29 }
 0x22e   : > { %1797 = vst [vmem:[%s4093_s24 + $0xa8] sm:$0xff] %v1723_v59 }
 0x22f   : > { %v1628_v31 = vadd.f32 %v2497_v3, %v4067_v30  ;;  %1796 = vst [vmem:[%s4093_s24 + $0xa0] sm:$0xff] %v1718_v8  ;;  %v2223_v37 = vpop.f32.mrb[134].mxu1 }
 0x230   : > { %v1407_v5 = vpop.f32.mrb[6].mxu0  ;;  %v1733_v40 = vadd.f32 %v4056_v9, %v2223_v37  ;;  %v1727_v56 = vpop.f32.mrb[135].mxu1 }
 0x231   : > { %1778 = vst [vmem:[%s4093_s24 + $0x10] sm:$0xff] %v1628_v31  ;;  %v2499_v0 = vadd.f32 %v1407_v5, %v733_v51  ;;  %v1409_v42 = vpop.f32.mrb[7].mxu0  ;;  %v1728_v26 = vadd.f32 %v4049_v33, %v1727_v56 }
 0x232   : > { %1799 = vst [vmem:[%s4093_s24 + $0xb8] sm:$0xff] %v1733_v40 }
 0x233   : > { %v1633_v30 = vadd.f32 %v2499_v0, %v4062_v57  ;;  %1798 = vst [vmem:[%s4093_s24 + $0xb0] sm:$0xff] %v1728_v26  ;;  %v2226_v13 = vpop.f32.mrb[136].mxu1 }
 0x234   : > { %v1412_v60 = vpop.f32.mrb[8].mxu0  ;;  %v1743_v9 = vadd.f32 %v4074_v61, %v2226_v13  ;;  %v1737_v49 = vpop.f32.mrb[137].mxu1 }
 0x235   : > { %1779 = vst [vmem:[%s4093_s24 + $0x18] sm:$0xff] %v1633_v30  ;;  %v2501_v39 = vadd.f32 %v1412_v60, %v738_v7  ;;  %v1414_v18 = vpop.f32.mrb[9].mxu0  ;;  %v1738_v33 = vadd.f32 %v4065_v2, %v1737_v49 }
 0x236   : > { %1801 = vst [vmem:[%s4093_s24 + $0xc8] sm:$0xff] %v1743_v9 }
 0x237   : > { %v1638_v57 = vadd.f32 %v2501_v39, %v4076_v24  ;;  %1800 = vst [vmem:[%s4093_s24 + $0xc0] sm:$0xff] %v1738_v33  ;;  %v2229_v17 = vpop.f32.mrb[138].mxu1 }
 0x238   : > { %v1417_v58 = vpop.f32.mrb[10].mxu0  ;;  %v1753_v61 = vadd.f32 %v4096_v27, %v2229_v17  ;;  %v1747_v50 = vpop.f32.mrb[139].mxu1 }
 0x239   : > { %1780 = vst [vmem:[%s4093_s24 + $0x20] sm:$0xff] %v1638_v57  ;;  %v2503_v20 = vadd.f32 %v1417_v58, %v743_v1  ;;  %v1419_v52 = vpop.f32.mrb[11].mxu0  ;;  %v1748_v2 = vadd.f32 %v4083_v25, %v1747_v50 }
 0x23a   : > { %1803 = vst [vmem:[%s4093_s24 + $0xd8] sm:$0xff] %v1753_v61 }
 0x23b   : > { %v1643_v24 = vadd.f32 %v2503_v20, %v4071_v38  ;;  %1802 = vst [vmem:[%s4093_s24 + $0xd0] sm:$0xff] %v1748_v2  ;;  %v2232_v54 = vpop.f32.mrb[140].mxu1 }
 0x23c   : > { %v1422_v6 = vpop.f32.mrb[12].mxu0  ;;  %v1763_v27 = vadd.f32 %v4114_v46, %v2232_v54  ;;  %v1757_v21 = vpop.f32.mrb[141].mxu1 }
 0x23d   : > { %1781 = vst [vmem:[%s4093_s24 + $0x28] sm:$0xff] %v1643_v24  ;;  %v2505_v48 = vadd.f32 %v1422_v6, %v748_v44  ;;  %v1424_v12 = vpop.f32.mrb[13].mxu0  ;;  %v1758_v25 = vadd.f32 %v4105_v53, %v1757_v21 }
 0x23e   : > { %1805 = vst [vmem:[%s4093_s24 + $0xe8] sm:$0xff] %v1763_v27 }
 0x23f   : > { %v1648_v38 = vadd.f32 %v2505_v48, %v4085_v47  ;;  %1804 = vst [vmem:[%s4093_s24 + $0xe0] sm:$0xff] %v1758_v25  ;;  %v2235_v23 = vpop.f32.mrb[142].mxu1 }
 0x240   : > { %v1427_v15 = vpop.f32.mrb[14].mxu0  ;;  %v1773_v46 = vadd.f32 %v4132_v16, %v2235_v23  ;;  %v1767_v41 = vpop.f32.mrb[143].mxu1 }
 0x241   : > { %1782 = vst [vmem:[%s4093_s24 + $0x30] sm:$0xff] %v1648_v38  ;;  %v2507_v28 = vadd.f32 %v1427_v15, %v753_v45  ;;  %v1429_v32 = vpop.f32.mrb[15].mxu0  ;;  %v1768_v11 = vadd.f32 %v4123_v63, %v1767_v41 }
 0x242   : > { %1807 = vst [vmem:[%s4093_s24 + $0xf8] sm:$0xff] %v1773_v46 }
 0x243   : > { %v1653_v53 = vadd.f32 %v2507_v28, %v4080_v14  ;;  %1806 = vst [vmem:[%s4093_s24 + $0xf0] sm:$0xff] %v1768_v11 }
 0x245   : > { %1783 = vst [vmem:[%s4093_s24 + $0x38] sm:$0xff] %v1653_v53 }
 0x246 PF: > { %s13_s14 = sadd.s32 1, %s2708_s14   ;;  %s4349_s12 = smov %s2704_s13 }
 0x247   : > { %p10_p5 = scmp.ge.s32.totalorder %s13_s14, 4   ;;  %s4350_s13 = smov %s4352_s15 }
 0x249   :  { %12 = sbr.rel (!%p10_p5) target bundleno = 2 (0x2), region = 64 }

</bundles_post_ra>
